<compile_context>
chip_gen: v5e
topology: v5e:2x2
jax: 0.10.0
libtpu: 0.0.40
codegen_flags: <defaults>
</compile_context>

<pallas_src>
import functools

import jax
import jax.numpy as jnp
import numpy as np
from jax.experimental import pallas as pl
from jax.experimental.pallas import tpu as pltpu


def _sepconv_kernel(x_ref, w_ref, b_ref, o_ref, *, stride, h_out, w_out, c_in, c_out):
    """One image per grid step.

    x_ref : (1, Cin, H+2, W+2)   zero-padded NCHW image
    w_ref : (Cout, 9*Cin)        folded 3x3 conv weights (dw * pw * BN-scale), tap-major
    b_ref : (Cout, 1)            folded bias (dw bias, pw bias, BN shift)
    o_ref : (1, Cout, Hout*Wout) channel-major, lane-dense output slab
    """
    xp = x_ref[0]                                     # (Cin, H+2, W+2), f32
    h_span = (h_out - 1) * stride + 1
    w_span = (w_out - 1) * stride + 1

    # im2col: nine shifted windows stacked along the (untiled) major dim, then one flatten of
    # the spatial dims into lanes -> (9*Cin, Hout*Wout).  Stride handled by subsampling the
    # window itself; the stride-1 intermediate is never materialized.
    pieces = [xp[:, kh:kh + h_span:stride, kw:kw + w_span:stride]   # (Cin, Hout, Wout)
              for kh in range(3) for kw in range(3)]
    patches = jnp.concatenate(pieces, axis=0)                        # (9*Cin, Hout, Wout)
    patches = patches.reshape(9 * c_in, h_out * w_out)               # lanes = Hout*Wout

    # Single MXU matmul: (Cout, 9*Cin) x (9*Cin, M) -> (Cout, M), f32 accumulation.
    acc = jnp.dot(w_ref[...], patches, preferred_element_type=jnp.float32)
    acc = acc + b_ref[...]                                           # folded bias (Cout,1)
    o_ref[0] = jnp.maximum(acc, 0.0).astype(o_ref.dtype)             # ReLU, full-lane store


def separable_conv2d(x_nchw, params, *, stride=1):
    """Forward pass matching the PyTorch SeparableConv2d module (eval-mode BN).

    x_nchw: (N, C_in, H, W) float32
    params: dict with keys
        w_dw (Cin*m, 3, 3), b_dw (Cin*m,), w_pw (Cout, Cin*m), b_pw (Cout,),
        bn_gamma, bn_beta, bn_mean, bn_var (all (Cout,)), multiplier m
    returns: (N, C_out, H_out, W_out) float32
    """
    assert stride in (1, 2), "stride must be 1 or 2"
    mult = int(params["multiplier"])
    n, c_in, h, w = x_nchw.shape
    c_out = params["w_pw"].shape[0]
    eps = 1e-5

    # ---- fold depthwise + pointwise + biases + eval-mode BN into a single 3x3 conv ----
    scale = params["bn_gamma"] / jnp.sqrt(params["bn_var"] + eps)            # (Cout,)
    shift = params["bn_beta"] - params["bn_mean"] * scale                    # (Cout,)
    w_dw_r = params["w_dw"].reshape(c_in, mult, 3, 3)                        # (Cin,m,3,3)
    w_pw_r = params["w_pw"].reshape(c_out, c_in, mult)                       # (Cout,Cin,m)
    # W2D[o, kh, kw, c] = scale[o] * sum_j w_dw[c,j,kh,kw] * w_pw[o,c,j]; flatten tap-major
    w2d = jnp.einsum("cjhw,ocj,o->ohwc", w_dw_r, w_pw_r, scale)              # (Cout,3,3,Cin)
    w2d = w2d.reshape(c_out, 9 * c_in).astype(jnp.float32)
    bias = scale * (params["b_pw"] + params["w_pw"] @ params["b_dw"]) + shift
    bias = bias.reshape(c_out, 1).astype(jnp.float32)

    # ---- output geometry (kernel 3, padding 1) ----
    h_out = (h - 1) // stride + 1
    w_out = (w - 1) // stride + 1
    m = h_out * w_out

    # Only host-side array pass: fused zero-pad of the NCHW input (no transpose, no gather).
    x_pad = jnp.pad(x_nchw.astype(jnp.float32), ((0, 0), (0, 0), (1, 1), (1, 1)))

    kernel = functools.partial(_sepconv_kernel, stride=stride, h_out=h_out,
                               w_out=w_out, c_in=c_in, c_out=c_out)

    out = pl.pallas_call(
        kernel,
        out_shape=jax.ShapeDtypeStruct((n, c_out, m), jnp.float32),
        grid_spec=pltpu.PrefetchScalarGridSpec(
            num_scalar_prefetch=0,
            grid=(n,),
            in_specs=[
                pl.BlockSpec((1, c_in, h + 2, w + 2), lambda i: (i, 0, 0, 0)),
                pl.BlockSpec((c_out, 9 * c_in), lambda i: (0, 0)),   # weights: resident
                pl.BlockSpec((c_out, 1), lambda i: (0, 0)),          # bias: resident
            ],
            out_specs=pl.BlockSpec((1, c_out, m), lambda i: (i, 0, 0)),
        ),
        compiler_params=pltpu.CompilerParams(dimension_semantics=("parallel",)),
    )(x_pad, w2d, bias)

    # Channel-major lane-dense slab -> NCHW is a free (metadata-only) reshape.
    return out.reshape(n, c_out, h_out, w_out)


def _reference(x_nchw, params, *, stride=1):
    """Pure-JAX reference (lax conv) matching the PyTorch module in eval mode."""
    c_in = x_nchw.shape[1]
    x = jnp.transpose(x_nchw, (0, 2, 3, 1))                                  # NHWC
    w_dw = jnp.transpose(params["w_dw"], (1, 2, 0))[:, :, None, :]           # (3,3,1,Cdw)
    dw = jax.lax.conv_general_dilated(
        x, w_dw, window_strides=(stride, stride), padding=((1, 1), (1, 1)),
        dimension_numbers=("NHWC", "HWIO", "NHWC"),
        feature_group_count=c_in)
    dw = dw + params["b_dw"][None, None, None, :]
    pw = jnp.einsum("nhwc,oc->nhwo", dw, params["w_pw"]) + params["b_pw"]
    eps = 1e-5
    bn = (pw - params["bn_mean"]) / jnp.sqrt(params["bn_var"] + eps)
    bn = bn * params["bn_gamma"] + params["bn_beta"]
    out = jnp.maximum(bn, 0.0)
    return jnp.transpose(out, (0, 3, 1, 2))


if __name__ == "__main__":
    def make_params(key, c_in, c_out, mult, nontrivial_bn):
        k_wdw, k_bdw, k_wpw, k_bpw, k_g, k_b, k_m, k_v = jax.random.split(key, 8)
        cdw = c_in * mult
        params = {
            "multiplier": mult,
            "w_dw": 0.1 * jax.random.normal(k_wdw, (cdw, 3, 3), jnp.float32),
            "b_dw": 0.1 * jax.random.normal(k_bdw, (cdw,), jnp.float32),
            "w_pw": 0.1 * jax.random.normal(k_wpw, (c_out, cdw), jnp.float32),
            "b_pw": 0.1 * jax.random.normal(k_bpw, (c_out,), jnp.float32),
        }
        if nontrivial_bn:
            params.update({
                "bn_gamma": 1.0 + 0.1 * jax.random.normal(k_g, (c_out,), jnp.float32),
                "bn_beta": 0.1 * jax.random.normal(k_b, (c_out,), jnp.float32),
                "bn_mean": 0.1 * jax.random.normal(k_m, (c_out,), jnp.float32),
                "bn_var": 1.0 + 0.5 * jnp.abs(jax.random.normal(k_v, (c_out,), jnp.float32)),
            })
        else:  # PyTorch BatchNorm2d default (fresh) statistics
            params.update({
                "bn_gamma": jnp.ones((c_out,), jnp.float32),
                "bn_beta": jnp.zeros((c_out,), jnp.float32),
                "bn_mean": jnp.zeros((c_out,), jnp.float32),
                "bn_var": jnp.ones((c_out,), jnp.float32),
            })
        return params

    key = jax.random.PRNGKey(0)
    k1, k2, kx1, kx2 = jax.random.split(key, 4)

    N, C_IN, H, W, C_OUT = 2, 4, 16, 16, 8

    # Config 1: multiplier=1, stride=1, fresh BN stats (module defaults).
    x1 = jax.random.normal(kx1, (N, C_IN, H, W), jnp.float32)
    p1 = make_params(k1, C_IN, C_OUT, mult=1, nontrivial_bn=False)
    out1 = jax.block_until_ready(separable_conv2d(x1, p1, stride=1))
    ref1 = jax.block_until_ready(_reference(x1, p1, stride=1))
    np.testing.assert_allclose(np.asarray(out1), np.asarray(ref1), rtol=1e-4, atol=1e-4)

    # Config 2: multiplier=2, stride=1, non-trivial ("trained") BN stats — exercises the
    # channel-multiplier fold and the BN fold paths.
    x2 = jax.random.normal(kx2, (N, C_IN, H, W), jnp.float32)
    p2 = make_params(k2, C_IN, C_OUT, mult=2, nontrivial_bn=True)
    out2 = jax.block_until_ready(separable_conv2d(x2, p2, stride=1))
    ref2 = jax.block_until_ready(_reference(x2, p2, stride=1))
    np.testing.assert_allclose(np.asarray(out2), np.asarray(ref2), rtol=1e-4, atol=1e-4)

    print("KERNEL_OK")
</pallas_src>

<mosaic_0001>
module attributes {stable_mosaic.version = 11 : i64} {
  func.func @_sepconv_kernel(%arg0: i32, %arg1: memref<1x4x18x18xf32, #tpu.memory_space<vmem>>, %arg2: memref<8x36xf32, #tpu.memory_space<vmem>>, %arg3: memref<8x1xf32, #tpu.memory_space<vmem>>, %arg4: memref<1x8x256xf32, #tpu.memory_space<vmem>>) attributes {dimension_semantics = [#tpu.dimension_semantics<parallel>], iteration_bounds = array<i64: 2>, scalar_prefetch = 0 : i64, scratch_operands = 0 : i64, tpu.core_type = #tpu.core_type<tc>, window_params = [{transform_indices = @transform_0, window_bounds = array<i64: 1, 4, 18, 18>}, {pipeline_mode = #tpu.pipeline_mode<synchronous>, transform_indices = @transform_1, window_bounds = array<i64: 8, 36>}, {pipeline_mode = #tpu.pipeline_mode<synchronous>, transform_indices = @transform_2, window_bounds = array<i64: 8, 1>}, {transform_indices = @transform_3, window_bounds = array<i64: 1, 8, 256>}]} {
    %c0 = arith.constant 0 : index
    %c0_0 = arith.constant 0 : index
    %c0_1 = arith.constant 0 : index
    %c0_2 = arith.constant 0 : index
    %0 = vector.load %arg1[%c0, %c0_0, %c0_1, %c0_2] : memref<1x4x18x18xf32, #tpu.memory_space<vmem>>, vector<1x4x18x18xf32>
    %1 = vector.shape_cast %0 : vector<1x4x18x18xf32> to vector<4x18x18xf32>
    %2 = vector.extract_strided_slice %1 {offsets = [0, 0, 0], sizes = [4, 16, 16], strides = [1, 1, 1]} : vector<4x18x18xf32> to vector<4x16x16xf32>
    %3 = vector.extract_strided_slice %1 {offsets = [0, 0, 1], sizes = [4, 16, 16], strides = [1, 1, 1]} : vector<4x18x18xf32> to vector<4x16x16xf32>
    %4 = vector.extract_strided_slice %1 {offsets = [0, 0, 2], sizes = [4, 16, 16], strides = [1, 1, 1]} : vector<4x18x18xf32> to vector<4x16x16xf32>
    %5 = vector.extract_strided_slice %1 {offsets = [0, 1, 0], sizes = [4, 16, 16], strides = [1, 1, 1]} : vector<4x18x18xf32> to vector<4x16x16xf32>
    %6 = vector.extract_strided_slice %1 {offsets = [0, 1, 1], sizes = [4, 16, 16], strides = [1, 1, 1]} : vector<4x18x18xf32> to vector<4x16x16xf32>
    %7 = vector.extract_strided_slice %1 {offsets = [0, 1, 2], sizes = [4, 16, 16], strides = [1, 1, 1]} : vector<4x18x18xf32> to vector<4x16x16xf32>
    %8 = vector.extract_strided_slice %1 {offsets = [0, 2, 0], sizes = [4, 16, 16], strides = [1, 1, 1]} : vector<4x18x18xf32> to vector<4x16x16xf32>
    %9 = vector.extract_strided_slice %1 {offsets = [0, 2, 1], sizes = [4, 16, 16], strides = [1, 1, 1]} : vector<4x18x18xf32> to vector<4x16x16xf32>
    %10 = vector.extract_strided_slice %1 {offsets = [0, 2, 2], sizes = [4, 16, 16], strides = [1, 1, 1]} : vector<4x18x18xf32> to vector<4x16x16xf32>
    %11 = tpu.concatenate %2, %3, %4, %5, %6, %7, %8, %9, %10 in 0 : vector<4x16x16xf32>, vector<4x16x16xf32>, vector<4x16x16xf32>, vector<4x16x16xf32>, vector<4x16x16xf32>, vector<4x16x16xf32>, vector<4x16x16xf32>, vector<4x16x16xf32>, vector<4x16x16xf32> -> vector<36x16x16xf32>
    %12 = vector.shape_cast %11 : vector<36x16x16xf32> to vector<36x256xf32>
    %c0_3 = arith.constant 0 : index
    %c0_4 = arith.constant 0 : index
    %13 = vector.load %arg2[%c0_3, %c0_4] : memref<8x36xf32, #tpu.memory_space<vmem>>, vector<8x36xf32>
    %cst = arith.constant dense<0.000000e+00> : vector<8x256xf32>
    %14 = tpu.matmul %13, %12, %cst {dimension_numbers = #tpu.dot_dimension_numbers<[1], [0], [0], [1], [0, 0, 1, 1], [], []>} : vector<8x36xf32>, vector<36x256xf32>, vector<8x256xf32> -> vector<8x256xf32>
    %c0_5 = arith.constant 0 : index
    %c0_6 = arith.constant 0 : index
    %15 = vector.load %arg3[%c0_5, %c0_6] : memref<8x1xf32, #tpu.memory_space<vmem>>, vector<8x1xf32>
    %16 = vector.broadcast %15 : vector<8x1xf32> to vector<8x256xf32>
    %17 = arith.addf %14, %16 : vector<8x256xf32>
    %cst_7 = arith.constant 0.000000e+00 : f32
    %18 = vector.broadcast %cst_7 : f32 to vector<8x256xf32>
    %19 = arith.maximumf %17, %18 : vector<8x256xf32>
    %c0_8 = arith.constant 0 : index
    %c0_9 = arith.constant 0 : index
    %c0_10 = arith.constant 0 : index
    %20 = vector.load %arg4[%c0_8, %c0_9, %c0_10] : memref<1x8x256xf32, #tpu.memory_space<vmem>>, vector<1x8x256xf32>
    %21 = vector.shape_cast %20 : vector<1x8x256xf32> to vector<8x256xf32>
    %22 = vector.shape_cast %19 : vector<8x256xf32> to vector<1x8x256xf32>
    tpu.vector_store %arg4[%c0_8, %c0_9, %c0_10], %22 {strides = array<i32>} : memref<1x8x256xf32, #tpu.memory_space<vmem>>, vector<1x8x256xf32>,
    return
  }
  func.func @transform_0(%arg0: i32) -> (i32, i32, i32, i32) {
    %c0_i32 = arith.constant 0 : i32
    %c0_i32_0 = arith.constant 0 : i32
    %c0_i32_1 = arith.constant 0 : i32
    %c0_i32_2 = arith.constant 0 : i32
    return %arg0, %c0_i32, %c0_i32_0, %c0_i32_1 : i32, i32, i32, i32
  }
  func.func @transform_1(%arg0: i32) -> (i32, i32) {
    %c0_i32 = arith.constant 0 : i32
    %c0_i32_0 = arith.constant 0 : i32
    %c0_i32_1 = arith.constant 0 : i32
    return %c0_i32, %c0_i32_0 : i32, i32
  }
  func.func @transform_2(%arg0: i32) -> (i32, i32) {
    %c0_i32 = arith.constant 0 : i32
    %c0_i32_0 = arith.constant 0 : i32
    %c0_i32_1 = arith.constant 0 : i32
    return %c0_i32, %c0_i32_0 : i32, i32
  }
  func.func @transform_3(%arg0: i32) -> (i32, i32, i32) {
    %c0_i32 = arith.constant 0 : i32
    %c0_i32_0 = arith.constant 0 : i32
    %c0_i32_1 = arith.constant 0 : i32
    return %arg0, %c0_i32, %c0_i32_0 : i32, i32, i32
  }
}

</mosaic_0001>

<bundles_post_ra>
// kernel: tpu_custom_call.1
= control target key start
LH: loop header
LB: loop body
LE: loop exit
PB: predicated region body
PF: predicated region fallthrough
CT: control target
= control target key end

     0   :  { %8 = vsyncpa [#allocation3], 0  ;;  %s3886_s0 = inlined_call_operand.vmem [shape: f32[2,4,18,18], index: 0, kind: input, shape index: {}]   ;;  %s3887_s1 = inlined_call_operand.vmem [shape: f32[8,36], index: 1, kind: input, shape index: {}]   ;;  %s3888_s2 = inlined_call_operand.vmem [shape: f32[8,1], index: 2, kind: input, shape index: {}]   ;;  %s3889_s3 = inlined_call_operand.hbm [shape: f32[2,8,256], index: 3, kind: output, shape index: {}]  }
   0x1   :  { %10 = vsyncpa [#allocation3 + $0x1], 0  ;;  %s2309_s12 = smov 0   ;;  %s2311_s13 = smov 0  }
   0x2   :  { %s2313_s14 = smov 0   ;;  %s2315_s15 = smov 0  }
   0x3 LB: > { %s2330_s16 = sadd.s32 4294967295, %s2275_s15   ;;  %s1899_s17 = sadd.s32 4294967294, %s2275_s15   ;;  %s2275_s15 = sphi %s2315_s15, %s4112_s15   ;;  %s2271_s14 = sphi %s2313_s14, %s4111_s14   ;;  %s2267_s13 = sphi %s2311_s13, %s4110_s13   ;;  %s2263_s12 = sphi %s2309_s12, %s4109_s12  }
   0x4   : > { %s2334_s18 = sadd.s32 1, %s2275_s15   ;;  %s91_s19 = sadd.s32 1, %s2271_s14 }
   0x5   : > { %s88_s20 = ssub.s32 %s2275_s15, %s2334_s18  ;;  %p101_p0 = scmp.ne.s32.totalorder %s2271_s14, %s2267_s13 }
   0x6   : > { %p89_p1 = scmp.eq.s32.totalorder %s88_s20, 0  ;;  %p102_p2 = scmp.eq.s32.totalorder %s2330_s16, 1 }
   0x7   : > { %p107_p3 = scmp.ne.s32.totalorder %s2267_s13, %s2263_s12  ;;  %p108_p4 = scmp.eq.s32.totalorder %s1899_s17, 1 }
   0x8   : > { %s2345_s21 = scalar_select %p89_p1, %s2271_s14, %s91_s19  }
   0x9   : > { %p2347_p5 = por %p102_p2, %p101_p0  ;;  %p2351_p6 = por %p108_p4, %p107_p3 }
   0xa   : > { %p1902_p7 = scmp.ge.s32.totalorder %s2275_s15, 1  ;;  %p140_p8 = scmp.lt.s32.totalorder %s2275_s15, 3 }
   0xc   : > { %p141_p9 = pnand %p1902_p7, %p140_p8 }
   0xe   : > { %144 = sbr.rel (%p141_p9) target bundleno = 581 (0x245), region = 32 }
  0x13   : > { %p164_p10 = scmp.lt.s32.totalorder %s2330_s16, 1  ;;  %s2277_s29 = smov 127   ;;  %vm241_vm0 = vcmask 1046528   ;;  %vm396_vm1 = vcmask 1047556   ;;  %vm318_vm2 = vcmask 1045504   ;;  %vm1684_vm3 = vcmask 130048  }
  0x14   : > { %s2278_s30 = smov 126   ;;  %s2281_s4 = smov 16   ;;  %vm1690_vm4 = vcmask 261120   ;;  %vm1696_vm5 = vcmask 392192   ;;  %vm1702_vm6 = vcmask 523264   ;;  %vm1708_vm7 = vcmask 654336  }
  0x15   : > { %s165_s24 = scalar_select %p164_p10, %s2330_s16, 1  ;;  %vm1720_vm8 = vcmask 916480   ;;  %vm1714_vm9 = vcmask 785408   ;;  %vm1772_vm10 = vcmask 1043456   ;;  %vm1768_vm11 = vcmask 293888  }
  0x16   : > { %s2282_s5 = smov 32   ;;  %s2283_s6 = smov 96  }
  0x17   : > { %s1915_s25 = smul.u32 96, %s165_s24  ;;  %s2284_s7 = smov 80  }
  0x18   : > { %s2285_s8 = smov 64   ;;  %s2286_s9 = smov 48  }
  0x19   : > { %s2362_s28 = scalar_lea.vmem %s3886_s0, %s1915_s25  ;;  %s2287_s10 = smov 112  }
  0x1a   : > { %v2365_v0 = vld [vmem:[%s2362_s28 + $0x30] sm:$0xff]  ;;  %v2368_v1 = vld [vmem:[%s2362_s28 + $0x38] sm:$0xff]  ;;  %v2371_v2 = vld [vmem:[%s2362_s28] sm:$0xff]  ;;  %s161_s24 = sand.u32 1, %s2267_s13   ;;  %s1914_s26 = sshll.u32 %s2330_s16, 4 }
  0x1b   : > { %3956 = vst [vmem:[#allocation5_spill] sm:$0xff] %v2371_v2  ;;  %v2375_v3 = vpack.i.bf16 %v2368_v1, %v2365_v0  ;;  %v2378_v4 = vld [vmem:[%s2362_s28 + $0x8] sm:$0xff]  ;;  %v2383_v6 = vld [vmem:[%s2362_s28 + $0x40] sm:$0x3]  ;;  %v2391_v8 = vld [vmem:[%s2362_s28 + $0x50] sm:$0xff]  ;;  %v252_v9 = vrot.slane %v2365_v0, 1 }
  0x1c   : > { %3957 = vst [vmem:[#allocation6_spill] sm:$0xff] %v2378_v4  ;;  %v1967_v5 = vpack.i.bf16 %v2378_v4, %v2371_v2  ;;  %v2388_v7 = vld [vmem:[%s2362_s28 + $0x48] sm:$0xff]  ;;  %v171_v10 = vld [vmem:[%s2362_s28 + $0x10] sm:$0x3]  ;;  %v2397_v11 = vld [vmem:[%s2362_s28 + $0x18] sm:$0xff]  ;;  %v253_v13 = vrot.slane %v2368_v1, 1 }
  0x1d   : > { %1978 = vrot.lane.b32.xlu1 %v2375_v3, %s2277_s29  ;;  %3958 = vst [vmem:[#allocation7_spill] sm:$0xff] %v2397_v11  ;;  %v2400_v12 = vld [vmem:[%s2362_s28 + $0x20] sm:$0xff]  ;;  %v255_v14 = vrot.slane %v2383_v6, 1  ;;  %v1982_v15 = vpack.i.bf16 %v2391_v8, %v2388_v7  ;;  %v2408_v16 = vld [vmem:[%s2362_s28 + $0x28] sm:$0x3]  ;;  %v243_v17 = vrot.slane %v2378_v4, 1 }
  0x1e   : > { %1968 = vrot.lane.b32.xlu0 %v1967_v5, %s2277_s29  ;;  %3959 = vst [vmem:[#allocation8_spill] sm:$0xff] %v2400_v12  ;;  %1988 = vrot.lane.b32.xlu2 %v1967_v5, %s2278_s30  ;;  %v254_v18 = vsel %vm241_vm0, %v252_v9, %v253_v13  ;;  %v242_v20 = vrot.slane %v2371_v2, 1  ;;  %v245_v21 = vrot.slane %v171_v10, 1  ;;  %v1972_v22 = vpack.i.bf16 %v2400_v12, %v2397_v11  ;;  %v180_v34 = vld [vmem:[%s2362_s28 + $0x58] sm:$0x3]  ;;  %s1903_s25 = sshll.u32 %s161_s24, 4 }
  0x1f   : > { %v256_v19 = vsel %vm241_vm0, %v253_v13, %v255_v14  ;;  %v532_v24 = vrot.slane %v254_v18, 4  ;;  %v247_v25 = vrot.slane %v2397_v11, 1  ;;  %v248_v26 = vrot.slane %v2400_v12, 1  ;;  %s1824_s16 = scalar_lea.sflag [#allocation3], %s161_s24 }
  0x20   : > { %v1036_v23 = vrot.slane %v256_v19, 4  ;;  %v250_v27 = vrot.slane %v2408_v16, 1  ;;  %v246_v28 = vsel %vm241_vm0, %v243_v17, %v245_v21  ;;  %v244_v29 = vsel %vm241_vm0, %v242_v20, %v243_v17 }
  0x21   : > { %v1038_v31 = vrot.slane %v246_v28, 4  ;;  %v2427_v32 = vsel %vm396_vm1, %v532_v24, %v244_v29  ;;  %v534_v33 = vrot.slane %v244_v29, 4  ;;  %v249_v35 = vsel %vm241_vm0, %v247_v25, %v248_v26 }
  0x22   : > { %v2423_v30 = vsel %vm396_vm1, %v1036_v23, %v246_v28  ;;  %v251_v36 = vsel %vm241_vm0, %v248_v26, %v250_v27  ;;  %v546_v38 = vrot.slane %v249_v35, 4  ;;  %v257_v40 = vrot.slane %v2388_v7, 1 }
  0x23   : > { %v2433_v37 = vsel %vm396_vm1, %v256_v19, %v1038_v31  ;;  %v2437_v39 = vsel %vm396_vm1, %v254_v18, %v534_v33  ;;  %v258_v41 = vrot.slane %v2391_v8, 1  ;;  %v1050_v42 = vrot.slane %v251_v36, 4 }
  0x24   : > { %3960 = vst [vmem:[#allocation9_spill] sm:$0xff] %v2433_v37  ;;  %v260_v43 = vrot.slane %v180_v34, 1  ;;  %v319_v44 = vrot.slane %v2371_v2, 2  ;;  %v320_v45 = vrot.slane %v2378_v4, 2  ;;  %v322_v46 = vrot.slane %v171_v10, 2 }
  0x25   : > { %1983 = vrot.lane.b32.xlu1 %v1982_v15, %s2277_s29  ;;  %3961 = vst [vmem:[#allocation10_spill] sm:$0xff] %v2437_v39  ;;  %v259_v47 = vsel %vm241_vm0, %v257_v40, %v258_v41  ;;  %v2007_v48 = vpack.i.bf16 %v246_v28, %v244_v29  ;;  %v329_v60 = vrot.slane %v2365_v0, 2  ;;  %v330_v61 = vrot.slane %v2368_v1, 2 }
  0x26   : > { %1973 = vrot.lane.b32.xlu0 %v1972_v22, %s2277_s29  ;;  %1993 = vrot.lane.b32.xlu2 %v1972_v22, %s2278_s30  ;;  %v261_v49 = vsel %vm241_vm0, %v258_v41, %v260_v43  ;;  %v544_v50 = vrot.slane %v259_v47, 4  ;;  %v2446_v51 = vsel %vm396_vm1, %v259_v47, %v546_v38  ;;  %v321_v54 = vsel %vm318_vm2, %v319_v44, %v320_v45 }
  0x27   : > { %v1048_v52 = vrot.slane %v261_v49, 4  ;;  %v2450_v53 = vsel %vm396_vm1, %v261_v49, %v1050_v42  ;;  %v323_v56 = vsel %vm318_vm2, %v320_v45, %v322_v46  ;;  %v734_v57 = vrot.slane %v321_v54, 4 }
  0x28   : > { %v2456_v55 = vsel %vm396_vm1, %v544_v50, %v249_v35  ;;  %v1238_v59 = vrot.slane %v323_v56, 4  ;;  %v332_v62 = vrot.slane %v2383_v6, 2  ;;  %v2017_v63 = vpack.i.bf16 %v256_v19, %v254_v18 }
  0x29   : > { %v2460_v58 = vsel %vm396_vm1, %v1048_v52, %v251_v36  ;;  %v331_v5 = vsel %vm318_vm2, %v329_v60, %v330_v61  ;;  %v334_v18 = vrot.slane %v2388_v7, 2  ;;  %v335_v19 = vrot.slane %v2391_v8, 2 }
  0x2a   : > { %v333_v9 = vsel %vm318_vm2, %v330_v61, %v332_v62  ;;  %v732_v13 = vrot.slane %v331_v5, 4  ;;  %v2469_v14 = vsel %vm396_vm1, %v331_v5, %v734_v57  ;;  %v337_v21 = vrot.slane %v180_v34, 2 }
  0x2b   : > { %v1236_v10 = vrot.slane %v333_v9, 4  ;;  %v2472_v17 = vsel %vm396_vm1, %v333_v9, %v1238_v59  ;;  %v336_v22 = vsel %vm318_vm2, %v334_v18, %v335_v19  ;;  %v325_v23 = vrot.slane %v2400_v12, 2 }
  0x2c   : > { %v2476_v20 = vsel %vm396_vm1, %v732_v13, %v321_v54  ;;  %v327_v24 = vrot.slane %v2408_v16, 2  ;;  %v338_v25 = vsel %vm318_vm2, %v335_v19, %v337_v21  ;;  %v744_v26 = vrot.slane %v336_v22, 4 }
  0x2d   : > { %2003 = vrot.lane.b32.xlu1 %v1982_v15, %s2278_s30  ;;  %v2022_v15 = vpack.i.bf16 %v261_v49, %v259_v47  ;;  %v2479_v6 = vsel %vm396_vm1, %v1236_v10, %v323_v56  ;;  %v1248_v28 = vrot.slane %v338_v25, 4  ;;  %v324_v29 = vrot.slane %v2397_v11, 2 }
  0x2e   : > { %1998 = vrot.lane.b32.xlu0 %v2375_v3, %s2278_s30  ;;  %2008 = vrot.lane.b32.xlu2 %v2007_v48, %s2277_s29  ;;  %v2012_v3 = vpack.i.bf16 %v251_v36, %v249_v35  ;;  %v328_v27 = vsel %vm318_vm2, %v325_v23, %v327_v24  ;;  %v2047_v36 = vpack.i.bf16 %v323_v56, %v321_v54  ;;  %v2279_v45 = vmov 1983009808  }
  0x2f   : > { %v1250_v31 = vrot.slane %v328_v27, 4  ;;  %v1249_v33 = vsel %vm396_vm1, %v1248_v28, %v328_v27  ;;  %v326_v34 = vsel %vm318_vm2, %v324_v29, %v325_v23  ;;  %v2062_v42 = vpack.i.bf16 %v338_v25, %v336_v22 }
  0x30   : > { %v745_v35 = vsel %vm396_vm1, %v744_v26, %v326_v34  ;;  %v746_v38 = vrot.slane %v326_v34, 4  ;;  %v2052_v41 = vpack.i.bf16 %v328_v27, %v326_v34  ;;  %v2057_v43 = vpack.i.bf16 %v333_v9, %v331_v5 }
  0x31   : > { %v1251_v16 = vsel %vm396_vm1, %v338_v25, %v1250_v31  ;;  %v401_v46 = vunpack.c.l.s4 %v2279_v45  ;;  %v395_v57 = vrot.slane %v2365_v0, 4 }
  0x32   : > { %v2499_v40 = vsel %vm396_vm1, %v336_v22, %v746_v38 }
  0x35   : > { %2018 = vrot.lane.b32.xlu1 %v2017_v63, %s2277_s29 }
  0x36   : > { %2013 = vrot.lane.b32.xlu0 %v2012_v3, %s2277_s29  ;;  %2023 = vrot.lane.b32.xlu2 %v2022_v15, %s2277_s29 }
  0x3d   : > { %2033 = vrot.lane.b32.xlu1 %v2012_v3, %s2278_s30 }
  0x3e   : > { %2028 = vrot.lane.b32.xlu0 %v2007_v48, %s2278_s30  ;;  %2038 = vrot.lane.b32.xlu2 %v2017_v63, %s2278_s30  ;;  %v2518_v48 = vunpack.c.0.s8 %v401_v46 }
  0x40   : > { %v2522_v49 = vperm.slane %v2423_v30, %v2518_v48  ;;  %v539_v50 = vperm.slane %v2427_v32, %v2518_v48  ;;  %v2528_v52 = vperm.slane %v2446_v51, %v2518_v48  ;;  %v912_v30 = vrot.slane %v2391_v8, 4 }
  0x41   : > { %v2546_v0 = vperm.slane %v2450_v53, %v2518_v48  ;;  %v2550_v8 = vperm.slane %v2469_v14, %v2518_v48  ;;  %v2557_v10 = vperm.slane %v2472_v17, %v2518_v48  ;;  %v2564_v18 = vperm.slane %v1249_v33, %v2518_v48 }
  0x42   : > { %3962 = vst [vmem:[#allocation11_spill] sm:$0xff] %v2528_v52  ;;  %v582_v51 = vrot.slane %v539_v50, 4  ;;  %v2567_v14 = vperm.slane %v1251_v16, %v2518_v48  ;;  %v551_v21 = vperm.slane %v2456_v55, %v2518_v48  ;;  %v2572_v17 = vperm.slane %v745_v35, %v2518_v48 }
  0x43   : > { %3963 = vst [vmem:[#allocation12_spill] sm:$0xff] %v2546_v0  ;;  %v2584_v55 = vperm.slane %v2476_v20, %v2518_v48 }
  0x44   : > { %3964 = vst [vmem:[#allocation13_spill] sm:$0xff] %v2550_v8  ;;  %v580_v28 = vrot.slane %v551_v21, 4 }
  0x45   : > { %2048 = vrot.lane.b32.xlu1 %v2047_v36, %s2277_s29  ;;  %3965 = vst [vmem:[#allocation14_spill] sm:$0xff] %v2557_v10 }
  0x46   : > { %2043 = vrot.lane.b32.xlu0 %v2022_v15, %s2278_s30  ;;  %2053 = vrot.lane.b32.xlu2 %v2052_v41, %s2277_s29  ;;  %3966 = vst [vmem:[#allocation15_spill] sm:$0xff] %v2567_v14  ;;  %v397_v41 = vsel %vm396_vm1, %v395_v57, %v2371_v2  ;;  %v2612_v57 = vsel %vm396_vm1, %v551_v21, %v582_v51 }
  0x4d   : > { %2063 = vrot.lane.b32.xlu1 %v2062_v42, %s2277_s29  ;;  %v2601_v42 = vsel %vm396_vm1, %v580_v28, %v539_v50 }
  0x4e   : > { %2058 = vrot.lane.b32.xlu0 %v2057_v43, %s2277_s29  ;;  %371 = vrot.lane.b32.xlu2 %v321_v54, %s2278_s30  ;;  %v900_v54 = vrot.slane %v2368_v1, 4  ;;  %s1835_s29 = scalar_lea.hbm %s3889_s3, %s1914_s26 }
  0x55   : > { %385 = vrot.lane.b32.xlu1 %v338_v25, %s2278_s30 }
  0x56   : > { %383 = vrot.lane.b32.xlu0 %v336_v22, %s2278_s30  ;;  %375 = vrot.lane.b32.xlu2 %v326_v34, %s2278_s30 }
  0x5d   : > { %379 = vrot.lane.b32.xlu1 %v331_v5, %s2278_s30 }
  0x5e   : > { %377 = vrot.lane.b32.xlu0 %v328_v27, %s2278_s30  ;;  %381 = vrot.lane.b32.xlu2 %v333_v9, %s2278_s30 }
  0x66   : > { %373 = vrot.lane.b32.xlu0 %v323_v56, %s2278_s30  ;;  %v408_v56 = vrot.slane %v2388_v7, 4  ;;  %s163_s30 = scalar_lea.vmem [#allocation2], %s1903_s25 }
  0x68   : > { %v409_v53 = vsel %vm396_vm1, %v408_v56, %v2397_v11  ;;  %v2280_v56 = vmov 1934713408  }
  0x69   : > { %v2580_v27 = vperm.slane %v409_v53, %v2518_v48 }
  0x6b   : > { %v444_v46 = vrot.slane %v2580_v27, 4 }
  0x78   : > { %v2514_v44 = vpop.permute.xlu2 %1988 }
  0x79   : > { %v3890_v38 = vunpack.i.h.bf16 %v2514_v44  ;;  %v3892_v25 = vunpack.i.l.bf16 %v2514_v44 }
  0x80   : > { %v2516_v47 = vpop.permute.xlu2 %1993 }
  0x81   : > { %v3891_v50 = vunpack.i.h.bf16 %v2516_v47 }
  0x88   : > { %v2541_v3 = vpop.permute.xlu2 %2008 }
  0x89   : > { %v2010_v62 = vunpack.i.l.bf16 %v2541_v3 }
  0x8f   : > { %v2539_v63 = vpop.permute.xlu1 %1978 }
  0x90   : > { %v1981_v5 = vunpack.i.h.bf16 %v2539_v63  ;;  %v2553_v9 = vpop.permute.xlu0 %1968  ;;  %v1980_v22 = vunpack.i.l.bf16 %v2539_v63  ;;  %v449_v63 = vunpack.c.l.s4 %v2280_v56  ;;  %v403_v56 = vperm.slane %v397_v41, %v2518_v48 }
  0x91   : > { %v1971_v13 = vunpack.i.h.bf16 %v2553_v9  ;;  %v1970_v15 = vunpack.i.l.bf16 %v2553_v9 }
  0x92   : > { %v924_v19 = vrot.slane %v1981_v5, 4  ;;  %v2620_v59 = vunpack.c.0.s8 %v449_v63  ;;  %v420_v60 = vrot.slane %v1980_v22, 4 }
  0x93   : > { %v926_v23 = vrot.slane %v1971_v13, 4  ;;  %v422_v24 = vrot.slane %v1970_v15, 4 }
  0x94   : > { %v925_v26 = vsel %vm396_vm1, %v924_v19, %v1971_v13 }
  0x95   : > { %v2587_v29 = vsel %vm396_vm1, %v1981_v5, %v926_v23  ;;  %v2590_v31 = vsel %vm396_vm1, %v1980_v22, %v422_v24  ;;  %v913_v5 = vsel %vm396_vm1, %v912_v30, %v2400_v12  ;;  %v2607_v13 = vperm.slane %v925_v26, %v2518_v48  ;;  %v2609_v23 = vpop.permute.xlu2 %2023 }
  0x96   : > { %v1995_v24 = vunpack.i.l.bf16 %v2516_v47  ;;  %v2623_v51 = vperm.slane %v913_v5, %v2518_v48  ;;  %v901_v5 = vsel %vm396_vm1, %v900_v54, %v2378_v4  ;;  %v446_v22 = vrot.slane %v403_v56, 4 }
  0x97   : > { %v1984_v20 = vpop.permute.xlu1 %1983  ;;  %v974_v21 = vrot.slane %v2607_v13, 4  ;;  %v3979_v4 = vunpack.i.h.bf16 %v2516_v47 }
  0x98   : > { %v1986_v43 = vunpack.i.h.bf16 %v1984_v20  ;;  %v1974_v45 = vpop.permute.xlu0 %1973  ;;  %v1985_v30 = vunpack.i.l.bf16 %v1984_v20  ;;  %v522_v63 = vrot.slane %v1995_v24, 4  ;;  %v948_v1 = vrot.slane %v2623_v51, 4 }
  0x99   : > { %v1976_v53 = vunpack.i.h.bf16 %v1974_v45  ;;  %v1975_v19 = vunpack.i.l.bf16 %v1974_v45  ;;  %v445_v45 = vsel %vm396_vm1, %v444_v46, %v403_v56  ;;  %v1026_v46 = vrot.slane %v3891_v50, 4 }
  0x9a   : > { %v936_v28 = vrot.slane %v1986_v43, 4  ;;  %v432_v54 = vrot.slane %v1985_v30, 4  ;;  %v421_v56 = vsel %vm396_vm1, %v420_v60, %v1970_v15  ;;  %v3898_v50 = vunpack.i.l.bf16 %v2609_v23 }
  0x9b   : > { %v938_v7 = vrot.slane %v1976_v53, 4  ;;  %v434_v26 = vrot.slane %v1975_v19, 4  ;;  %v510_v60 = vrot.slane %v3892_v25, 4 }
  0x9c   : > { %v937_v61 = vsel %vm396_vm1, %v936_v28, %v1976_v53  ;;  %v2648_v53 = vperm.slane %v445_v45, %v2620_v59  ;;  %v447_v28 = vsel %vm396_vm1, %v2580_v27, %v446_v22  ;;  %v3970_v27 = vunpack.i.h.bf16 %v2541_v3 }
  0x9d   : > { %v2627_v32 = vsel %vm396_vm1, %v1986_v43, %v938_v7  ;;  %v2630_v41 = vperm.slane %v937_v61, %v2518_v48  ;;  %v2633_v20 = vsel %vm396_vm1, %v1985_v30, %v434_v26  ;;  %v1014_v7 = vrot.slane %v3890_v38, 4  ;;  %v2653_v16 = vpop.permute.xlu2 %2038 }
  0x9e   : > { %3967 = vst [vmem:[#allocation16_spill] sm:$0xff] %v2648_v53  ;;  %v3895_v30 = vunpack.i.h.bf16 %v2609_v23  ;;  %v2689_v25 = vperm.slane %v447_v28, %v2620_v59  ;;  %v3903_v52 = vunpack.i.h.bf16 %v2653_v16 }
  0x9f   : > { %v2645_v61 = vsel %vm396_vm1, %v2630_v41, %v974_v21  ;;  %v2004_v43 = vpop.permute.xlu1 %2003  ;;  %v2656_v21 = vperm.slane %v901_v5, %v2518_v48  ;;  %v2670_v5 = vperm.slane %v2499_v40, %v2518_v48  ;;  %v622_v40 = vrot.slane %v2010_v62, 4 }
  0xa0   : > { %v2006_v26 = vunpack.i.h.bf16 %v2004_v43  ;;  %v2005_v34 = vunpack.i.l.bf16 %v2004_v43  ;;  %v1999_v33 = vpop.permute.xlu0 %1998  ;;  %3971 = vst [vmem:[#allocation19_spill] sm:$0xff] %v2689_v25 }
  0xa1   : > { %v2001_v36 = vunpack.i.h.bf16 %v1999_v33  ;;  %v2000_v35 = vunpack.i.l.bf16 %v1999_v33  ;;  %3968 = vst [vmem:[#allocation17_spill] sm:$0xff] %v2670_v5  ;;  %v949_v15 = vsel %vm396_vm1, %v948_v1, %v2656_v21  ;;  %v2678_v33 = vperm.slane %v2587_v29, %v2518_v48 }
  0xa2   : > { %v523_v45 = vsel %vm396_vm1, %v2005_v34, %v522_v63  ;;  %v1027_v43 = vsel %vm396_vm1, %v2006_v26, %v1026_v46  ;;  %v520_v9 = vrot.slane %v2005_v34, 4  ;;  %v427_v46 = vperm.slane %v421_v56, %v2518_v48 }
  0xa3   : > { %v1015_v38 = vsel %vm396_vm1, %v2001_v36, %v1014_v7  ;;  %3969 = vst [vmem:[#allocation18_spill] sm:$0xff] %v2678_v33  ;;  %v433_v63 = vsel %vm396_vm1, %v432_v54, %v1975_v19  ;;  %v2684_v7 = vrot.slane %v3970_v27, 4  ;;  %v511_v22 = vsel %vm396_vm1, %v2000_v35, %v510_v60 }
  0xa4   : > { %v2693_v29 = vperm.slane %v2590_v31, %v2518_v48  ;;  %v2697_v1 = vrot.slane %v3895_v30, 4  ;;  %v2701_v19 = vrot.slane %v3898_v50, 4  ;;  %v2704_v56 = vperm.slane %v949_v15, %v2620_v59 }
  0xa5   : > { %v439_v60 = vperm.slane %v433_v63, %v2518_v48  ;;  %v521_v28 = vsel %vm396_vm1, %v520_v9, %v1995_v24  ;;  %v508_v27 = vrot.slane %v2000_v35, 4  ;;  %v470_v30 = vrot.slane %v427_v46, 4  ;;  %v2724_v0 = vpop.permute.xlu2 %2053 }
  0xa6   : > { %3972 = vst [vmem:[#allocation20_spill] sm:$0xff] %v2693_v29  ;;  %v3904_v50 = vunpack.i.l.bf16 %v2653_v16  ;;  %v1024_v37 = vrot.slane %v2006_v26, 4  ;;  %v1012_v39 = vrot.slane %v2001_v36, 4  ;;  %v527_v24 = vperm.slane %v521_v28, %v2518_v48 }
  0xa7   : > { %v2019_v54 = vpop.permute.xlu1 %2018  ;;  %3973 = vst [vmem:[#allocation21_spill] sm:$0xff] %v2704_v56  ;;  %v2718_v35 = vperm.slane %v2601_v42, %v2620_v59  ;;  %v2722_v9 = vperm.slane %v2612_v57, %v2620_v59  ;;  %v2728_v36 = vperm.slane %v2627_v32, %v2518_v48  ;;  %v468_v26 = vrot.slane %v439_v60, 4 }
  0xa8   : > { %v2020_v34 = vunpack.i.l.bf16 %v2019_v54  ;;  %v2708_v31 = vpop.permute.xlu0 %2013  ;;  %v2736_v42 = vperm.slane %v2633_v20, %v2518_v48  ;;  %v2021_v63 = vunpack.i.h.bf16 %v2019_v54  ;;  %v2740_v57 = vrot.slane %v3903_v52, 4 }
  0xa9   : > { %3974 = vst [vmem:[#allocation22_spill] sm:$0xff] %v2718_v35  ;;  %v2744_v32 = vrot.slane %v3904_v50, 4  ;;  %v471_v33 = vsel %vm396_vm1, %v439_v60, %v470_v30  ;;  %v2015_v20 = vunpack.i.l.bf16 %v2708_v31  ;;  %v2755_v54 = vperm.slane %v523_v45, %v2518_v48 }
  0xaa   : > { %v620_v12 = vrot.slane %v2020_v34, 4  ;;  %v623_v15 = vsel %vm396_vm1, %v2020_v34, %v622_v40  ;;  %3975 = vst [vmem:[#allocation23_spill] sm:$0xff] %v2722_v9  ;;  %v3977_v40 = vunpack.i.l.bf16 %v2514_v44  ;;  %v2758_v52 = vperm.slane %v1027_v43, %v2518_v48 }
  0xab   : > { %3976 = vst [vmem:[#allocation24_spill] sm:$0xff] %v2728_v36  ;;  %v1124_v60 = vrot.slane %v2021_v63, 4  ;;  %v2783_v47 = vperm.slane %v471_v33, %v2620_v59  ;;  %v3915_v33 = vunpack.i.h.bf16 %v2724_v0 }
  0xac   : > { %v509_v34 = vsel %vm396_vm1, %v508_v27, %v3977_v40  ;;  %v621_v28 = vsel %vm396_vm1, %v620_v12, %v2010_v62  ;;  %3978 = vst [vmem:[#allocation25_spill] sm:$0xff] %v2736_v42  ;;  %v1025_v27 = vsel %vm396_vm1, %v1024_v37, %v3979_v4  ;;  %v3980_v12 = vunpack.i.h.bf16 %v2514_v44 }
  0xad   : > { %3981 = vst [vmem:[#allocation26_spill] sm:$0xff] %v2755_v54  ;;  %v556_v40 = vrot.slane %v527_v24, 4  ;;  %v515_v50 = vperm.slane %v509_v34, %v2518_v48  ;;  %v2766_v37 = vperm.slane %v1015_v38, %v2518_v48  ;;  %v469_v44 = vsel %vm396_vm1, %v468_v26, %v427_v46 }
  0xae   : > { %v1013_v62 = vsel %vm396_vm1, %v1012_v39, %v3980_v12  ;;  %3982 = vst [vmem:[#allocation27_spill] sm:$0xff] %v2758_v52  ;;  %v2772_v45 = vperm.slane %v1025_v27, %v2518_v48  ;;  %v2016_v34 = vunpack.i.h.bf16 %v2708_v31  ;;  %v2780_v4 = vperm.slane %v511_v22, %v2518_v48 }
  0xaf   : > { %v2761_v30 = vpop.permute.xlu1 %2033  ;;  %3983 = vst [vmem:[#allocation28_spill] sm:$0xff] %v2766_v37  ;;  %v2775_v43 = vperm.slane %v1013_v62, %v2518_v48  ;;  %v634_v38 = vrot.slane %v2015_v20, 4  ;;  %v558_v27 = vrot.slane %v515_v50, 4  ;;  %v557_v62 = vsel %vm396_vm1, %v556_v40, %v515_v50  ;;  %v2802_v40 = vpop.permute.xlu2 %371 }
  0xb0   : > { %v2768_v39 = vpop.permute.xlu0 %2028  ;;  %3984 = vst [vmem:[#allocation29_spill] sm:$0xff] %v2780_v4  ;;  %v1127_v31 = vsel %vm396_vm1, %v2021_v63, %v2684_v7  ;;  %v2792_v12 = vperm.slane %v469_v44, %v2620_v59  ;;  %v2795_v22 = vperm.slane %v557_v62, %v2620_v59  ;;  %v3988_v26 = vunpack.i.h.bf16 %v2541_v3 }
  0xb1   : > { %3985 = vst [vmem:[#allocation30_spill] sm:$0xff] %v2783_v47  ;;  %v1138_v50 = vrot.slane %v2016_v34, 4  ;;  %v633_v7 = vsel %vm396_vm1, %v2701_v19, %v2015_v20  ;;  %v3989_v63 = vunpack.i.l.bf16 %v2609_v23  ;;  %v2812_v46 = vperm.slane %v623_v15, %v2518_v48 }
  0xb2   : > { %3986 = vst [vmem:[#allocation31_spill] sm:$0xff] %v2792_v12  ;;  %v1125_v52 = vsel %vm396_vm1, %v1124_v60, %v3988_v26  ;;  %v606_v62 = vrot.slane %v2795_v22, 4  ;;  %v2815_v3 = vperm.slane %v1127_v31, %v2518_v48  ;;  %v1137_v60 = vsel %vm396_vm1, %v2697_v1, %v2016_v34 }
  0xb3   : > { %3987 = vst [vmem:[#allocation32_spill] sm:$0xff] %v2795_v22  ;;  %v635_v44 = vsel %vm396_vm1, %v3989_v63, %v634_v38  ;;  %v559_v36 = vsel %vm396_vm1, %v527_v24, %v558_v27  ;;  %v2823_v19 = vperm.slane %v621_v28, %v2518_v48  ;;  %v2826_v20 = vperm.slane %v1125_v52, %v2518_v48 }
  0xb4   : > { %3990 = vst [vmem:[#allocation33_spill] sm:$0xff] %v2815_v3  ;;  %v3991_v38 = vrot.slane %v2648_v53, 4  ;;  %v607_v31 = vsel %vm396_vm1, %v2718_v35, %v606_v62  ;;  %v2837_v1 = vperm.slane %v633_v7, %v2518_v48  ;;  %v2840_v24 = vperm.slane %v635_v44, %v2518_v48 }
  0xb5   : > { %v3992_v28 = vunpack.i.h.bf16 %v2609_v23  ;;  %v2846_v27 = vperm.slane %v1137_v60, %v2518_v48  ;;  %v608_v62 = vrot.slane %v2722_v9, 4  ;;  %v2031_v44 = vunpack.i.h.bf16 %v2768_v39 }
  0xb6   : > { %v495_v15 = vsel %vm396_vm1, %v2792_v12, %v3991_v38  ;;  %v2849_v38 = vperm.slane %v559_v36, %v2620_v59  ;;  %v2030_v22 = vunpack.i.l.bf16 %v2768_v39  ;;  %v2036_v39 = vunpack.i.h.bf16 %v2761_v30 }
  0xb7   : > { %v2819_v26 = vpop.permute.xlu1 %2048  ;;  %v1139_v52 = vsel %vm396_vm1, %v3992_v28, %v1138_v50  ;;  %v2067_v34 = vpack.i.bf16 %v607_v31, %v495_v15  ;;  %v496_v15 = vrot.slane %v2783_v47, 4  ;;  %v2035_v7 = vunpack.i.l.bf16 %v2761_v30  ;;  %v2878_v30 = vpop.permute.xlu2 %375 }
  0xb8   : > { %v2834_v63 = vpop.permute.xlu0 %2043  ;;  %3993 = vst [vmem:[#allocation34_spill] sm:$0xff] %v2849_v38  ;;  %v2864_v28 = vperm.slane %v1139_v52, %v2518_v48  ;;  %v609_v36 = vsel %vm396_vm1, %v608_v62, %v2849_v38  ;;  %v1274_v60 = vrot.slane %v3915_v33, 4  ;;  %v1150_v50 = vrot.slane %v2031_v44, 4 }
  0xb9   : > { %2068 = vrot.lane.b32.xlu1 %v2067_v34, %s2281_s4  ;;  %v646_v53 = vrot.slane %v2030_v22, 4  ;;  %v645_v52 = vsel %vm396_vm1, %v2744_v32, %v2030_v22  ;;  %v3995_v31 = vunpack.i.l.bf16 %v2724_v0  ;;  %v497_v23 = vsel %vm396_vm1, %v496_v15, %v2689_v25 }
  0xba   : > { %3994 = vst [vmem:[#allocation35_spill] sm:$0xff] %v2864_v28  ;;  %v2051_v33 = vunpack.i.h.bf16 %v2819_v26  ;;  %v2072_v22 = vpack.i.bf16 %v609_v36, %v497_v23  ;;  %v1149_v15 = vsel %vm396_vm1, %v2740_v57, %v2031_v44  ;;  %v3997_v36 = vunpack.i.h.bf16 %v2653_v16 }
  0xbb   : > { %v770_v35 = vrot.slane %v3995_v31, 4  ;;  %v3999_v57 = vunpack.i.l.bf16 %v2819_v26  ;;  %v2909_v32 = vrot.slane %v2036_v39, 4  ;;  %v4002_v28 = vunpack.i.l.bf16 %v2834_v63 }
  0xbc   : > { %v846_v2 = vrot.slane %v2802_v40, 4 }
  0xbd   : > { %v758_v44 = vrot.slane %v3999_v57, 4  ;;  %v656_v4 = vrot.slane %v4002_v28, 4 }
  0xbf   : > { %v2064_v12 = vpop.permute.xlu1 %2063  ;;  %v2932_v42 = vpop.permute.xlu2 %381 }
  0xc0   : > { %v2066_v62 = vunpack.i.h.bf16 %v2064_v12  ;;  %v2065_v9 = vunpack.i.l.bf16 %v2064_v12  ;;  %v2059_v38 = vpop.permute.xlu0 %2058  ;;  %v2892_v12 = vperm.slane %v645_v52, %v2518_v48 }
  0xc1   : > { %v2060_v34 = vunpack.i.l.bf16 %v2059_v38  ;;  %2073 = vrot.lane.b32.xlu1 %v2072_v22, %s2282_s5  ;;  %v2061_v23 = vunpack.i.h.bf16 %v2059_v38  ;;  %v1262_v22 = vrot.slane %v2051_v33, 4 }
  0xc2   : > { %v771_v37 = vsel %vm396_vm1, %v2065_v9, %v770_v35  ;;  %v1275_v54 = vsel %vm396_vm1, %v2066_v62, %v1274_v60  ;;  %v1151_v35 = vsel %vm396_vm1, %v3997_v36, %v1150_v50  ;;  %v3998_v60 = vunpack.i.l.bf16 %v2653_v16 }
  0xc3   : > { %v2896_v3 = vperm.slane %v771_v37, %v2518_v48  ;;  %v2907_v52 = vperm.slane %v1275_v54, %v2518_v48  ;;  %v4001_v37 = vunpack.i.h.bf16 %v2834_v63  ;;  %v2915_v50 = vrot.slane %v2035_v7, 4 }
  0xc4   : > { %v647_v31 = vsel %vm396_vm1, %v3998_v60, %v646_v53  ;;  %v2918_v16 = vperm.slane %v1149_v15, %v2518_v48  ;;  %v759_v36 = vsel %vm396_vm1, %v2060_v34, %v758_v44  ;;  %v2923_v54 = vperm.slane %v1151_v35, %v2518_v48 }
  0xc5   : > { %3996 = vst [vmem:[#allocation36_spill] sm:$0xff] %v2896_v3  ;;  %v1160_v38 = vrot.slane %v4001_v37, 4  ;;  %v816_v53 = vrot.slane %v2896_v3, 4  ;;  %v2926_v60 = vperm.slane %v647_v31, %v2518_v48  ;;  %v1263_v37 = vsel %vm396_vm1, %v2061_v23, %v1262_v22 }
  0xc6   : > { %4000 = vst [vmem:[#allocation37_spill] sm:$0xff] %v2907_v52  ;;  %v1320_v15 = vrot.slane %v2907_v52, 4  ;;  %v2936_v29 = vperm.slane %v759_v36, %v2518_v48  ;;  %v792_v35 = vrot.slane %v2670_v5, 4  ;;  %v4005_v31 = vrot.slane %v2567_v14, 4 }
  0xc7   : > { %4003 = vst [vmem:[#allocation38_spill] sm:$0xff] %v2926_v60  ;;  %v2930_v28 = vpop.permute.xlu1 %385  ;;  %v2944_v57 = vsel %vm396_vm1, %v1160_v38, %v2036_v39  ;;  %v2947_v22 = vsel %vm396_vm1, %v656_v4, %v2035_v7  ;;  %v858_v52 = vrot.slane %v2878_v30, 4  ;;  %v2952_v36 = vperm.slane %v1263_v37, %v2518_v48 }
  0xc8   : > { %4004 = vst [vmem:[#allocation39_spill] sm:$0xff] %v2936_v29  ;;  %v384_v44 = vpop.permute.xlu0 %383  ;;  %v1297_v11 = vsel %vm396_vm1, %v4005_v31, %v2557_v10  ;;  %v793_v14 = vsel %vm396_vm1, %v792_v35, %v2550_v8  ;;  %v817_v31 = vsel %vm396_vm1, %v816_v53, %v2936_v29  ;;  %v1260_v39 = vrot.slane %v2061_v23, 4 }
  0xc9   : > { %v2960_v38 = vperm.slane %v793_v14, %v2620_v59  ;;  %v2963_v4 = vperm.slane %v817_v31, %v2620_v59  ;;  %v2966_v7 = vperm.slane %v1297_v11, %v2620_v59  ;;  %v1272_v37 = vrot.slane %v2066_v62, 4 }
  0xca   : > { %v756_v10 = vrot.slane %v2060_v34, 4  ;;  %v1321_v3 = vsel %vm396_vm1, %v1320_v15, %v2952_v36  ;;  %v4006_v35 = vrot.slane %v2630_v41, 4  ;;  %v768_v23 = vrot.slane %v2065_v9, 4 }
  0xcb   : > { %v838_v14 = vrot.slane %v2960_v38, 4  ;;  %v2976_v5 = vperm.slane %v1321_v3, %v2620_v59  ;;  %v1342_v31 = vrot.slane %v2966_v7, 4  ;;  %v856_v11 = vrot.slane %v384_v44, 4 }
  0xcc   : > { %v973_v53 = vsel %vm396_vm1, %v4006_v35, %v2607_v13  ;;  %v859_v62 = vsel %vm396_vm1, %v384_v44, %v858_v52  ;;  %v2982_v34 = vperm.slane %v2460_v58, %v2518_v48  ;;  %v4007_v41 = vrot.slane %v2772_v45, 4 }
  0xcd   : > { %v1261_v9 = vsel %vm396_vm1, %v1260_v39, %v2051_v33  ;;  %v2991_v3 = vsel %vm396_vm1, %v2963_v4, %v838_v14  ;;  %v2995_v35 = vsel %vm396_vm1, %v2976_v5, %v1342_v31  ;;  %v4009_v58 = vunpack.i.l.bf16 %v2819_v26 }
  0xce   : > { %v1061_v13 = vsel %vm396_vm1, %v4007_v41, %v2775_v43  ;;  %v1360_v14 = vrot.slane %v2930_v28, 4  ;;  %v867_v47 = vperm.slane %v859_v62, %v2518_v48  ;;  %v857_v26 = vsel %vm396_vm1, %v856_v11, %v2878_v30 }
  0xcf   : > { %v380_v15 = vpop.permute.xlu1 %379  ;;  %v2998_v52 = vperm.slane %v1061_v13, %v2620_v59  ;;  %v757_v44 = vsel %vm396_vm1, %v756_v10, %v4009_v58  ;;  %v1084_v13 = vrot.slane %v2982_v34, 4  ;;  %v4011_v60 = vunpack.i.l.bf16 %v2724_v0 }
  0xd0   : > { %v844_v8 = vrot.slane %v380_v15, 4  ;;  %v847_v41 = vsel %vm396_vm1, %v380_v15, %v846_v2  ;;  %v378_v33 = vpop.permute.xlu0 %377  ;;  %v3015_v2 = vperm.slane %v973_v53, %v2620_v59  ;;  %v998_v15 = vrot.slane %v2704_v56, 4 }
  0xd1   : > { %4008 = vst [vmem:[#allocation40_spill] sm:$0xff] %v2998_v52  ;;  %v855_v31 = vperm.slane %v847_v41, %v2518_v48  ;;  %v1361_v62 = vsel %vm396_vm1, %v1360_v14, %v378_v33  ;;  %v1110_v41 = vrot.slane %v2998_v52, 4  ;;  %v769_v30 = vsel %vm396_vm1, %v768_v23, %v4011_v60 }
  0xd2   : > { %v845_v10 = vsel %vm396_vm1, %v844_v8, %v2802_v40  ;;  %4010 = vst [vmem:[#allocation41_spill] sm:$0xff] %v3015_v2  ;;  %v4012_v11 = vunpack.i.h.bf16 %v2724_v0  ;;  %v1267_v40 = vperm.slane %v1261_v9, %v2518_v48  ;;  %v1085_v53 = vsel %vm396_vm1, %v1084_v13, %v2522_v49 }
  0xd3   : > { %v3019_v58 = vperm.slane %v845_v10, %v2518_v48  ;;  %v882_v39 = vrot.slane %v855_v31, 4  ;;  %v3033_v10 = vperm.slane %v857_v26, %v2518_v48  ;;  %v3038_v56 = vperm.slane %v1085_v53, %v2620_v59 }
  0xd4   : > { %v1273_v8 = vsel %vm396_vm1, %v1272_v37, %v4012_v11  ;;  %v3041_v60 = vperm.slane %v757_v44, %v2518_v48  ;;  %v1367_v0 = vperm.slane %v1361_v62, %v2518_v48  ;;  %v1243_v23 = vperm.slane %v2479_v6, %v2518_v48 }
  0xd5   : > { %v870_v14 = vrot.slane %v3019_v58, 4  ;;  %v883_v52 = vsel %vm396_vm1, %v867_v47, %v882_v39  ;;  %4013 = vst [vmem:[#allocation42_spill] sm:$0xff] %v3038_v56  ;;  %v1362_v9 = vrot.slane %v378_v33, 4  ;;  %v3053_v39 = vsel %vm396_vm1, %v3015_v2, %v998_v15 }
  0xd6   : > { %v3045_v37 = vperm.slane %v883_v52, %v2620_v59  ;;  %v3057_v44 = vsel %vm396_vm1, %v3038_v56, %v1110_v41  ;;  %v880_v26 = vrot.slane %v867_v47, 4  ;;  %v4016_v33 = vrot.slane %v2564_v18, 4 }
  0xd7   : > { %v871_v13 = vsel %vm396_vm1, %v3033_v10, %v870_v14  ;;  %v3071_v41 = vperm.slane %v2944_v57, %v2518_v48  ;;  %v1279_v47 = vperm.slane %v1273_v8, %v2518_v48  ;;  %v4017_v11 = vrot.slane %v2932_v42, 4 }
  0xd8   : > { %4014 = vst [vmem:[#allocation43_spill] sm:$0xff] %v3045_v37  ;;  %v374_v62 = vpop.permute.xlu0 %373  ;;  %1517 = vrot.lane.b32.xlu1 %v3045_v37, %s2283_s6  ;;  %v3062_v6 = vperm.slane %v871_v13, %v2620_v59  ;;  %v1285_v15 = vsel %vm396_vm1, %v4016_v33, %v1243_v23  ;;  %v806_v13 = vrot.slane %v3041_v60, 4  ;;  %v1372_v2 = vrot.slane %v1367_v0, 4 }
  0xd9   : > { %v1349_v53 = vsel %vm396_vm1, %v4017_v11, %v374_v62  ;;  %v1350_v14 = vrot.slane %v374_v62, 4  ;;  %v782_v33 = vrot.slane %v2584_v55, 4  ;;  %v4018_v57 = vunpack.i.h.bf16 %v2834_v63 }
  0xda   : > { %4015 = vst [vmem:[#allocation44_spill] sm:$0xff] %v3062_v6  ;;  %v1355_v52 = vperm.slane %v1349_v53, %v2518_v48  ;;  %1437 = vrot.lane.b32.xlu0 %v3062_v6, %s2282_s5  ;;  %v3087_v56 = vperm.slane %v769_v30, %v2518_v48  ;;  %v1310_v11 = vrot.slane %v1267_v40, 4  ;;  %v1363_v62 = vsel %vm396_vm1, %v2930_v28, %v1362_v9 }
  0xdb   : > { %v1163_v8 = vsel %vm396_vm1, %v4018_v57, %v2909_v32  ;;  %v881_v53 = vsel %vm396_vm1, %v880_v26, %v855_v31  ;;  %v783_v6 = vsel %vm396_vm1, %v2572_v17, %v782_v33  ;;  %v3097_v29 = vperm.slane %v2947_v22, %v2518_v48 }
  0xdc   : > { %v1374_v37 = vrot.slane %v1355_v52, 4  ;;  %v1373_v25 = vsel %vm396_vm1, %v1372_v2, %v1355_v52  ;;  %v1308_v32 = vrot.slane %v1279_v47, 4  ;;  %v1351_v30 = vsel %vm396_vm1, %v2932_v42, %v1350_v14 }
  0xdd   : > { %v3102_v57 = vperm.slane %v783_v6, %v2620_v59  ;;  %v1196_v28 = vrot.slane %v3071_v41, 4  ;;  %v1371_v31 = vperm.slane %v1363_v62, %v2518_v48  ;;  %v807_v9 = vsel %vm396_vm1, %v3087_v56, %v806_v13 }
  0xde   : > { %v1375_v2 = vsel %vm396_vm1, %v1367_v0, %v1374_v37  ;;  %v3113_v22 = vperm.slane %v881_v53, %v2620_v59  ;;  %v3116_v42 = vperm.slane %v1373_v25, %v2620_v59  ;;  %v4019_v6 = vrot.slane %v2846_v27, 4 }
  0xdf   : > { %v3110_v26 = vperm.slane %v1375_v2, %v2620_v59  ;;  %v1359_v14 = vperm.slane %v1351_v30, %v2518_v48  ;;  %v4020_v0 = vpack.i.bf16 %v2995_v35, %v2991_v3  ;;  %v3128_v37 = vperm.slane %v1285_v15, %v2620_v59 }
  0xe0   : > { %v1173_v52 = vsel %vm396_vm1, %v4019_v6, %v2826_v20  ;;  %v1286_v13 = vrot.slane %v1243_v23, 4  ;;  %v1311_v25 = vsel %vm396_vm1, %v1279_v47, %v1310_v11  ;;  %v1309_v33 = vsel %vm396_vm1, %v1308_v32, %v1267_v40 }
  0xe1   : > { %2088 = vrot.lane.b32.xlu1 %v4020_v0, %s2284_s7  ;;  %4021 = vst [vmem:[#allocation45_spill] sm:$0xff] %v3128_v37  ;;  %1577 = vrot.lane.b32.xlu2 %v3110_v26, %s2282_s5  ;;  %v815_v62 = vperm.slane %v807_v9, %v2620_v59  ;;  %v834_v53 = vrot.slane %v3102_v57, 4  ;;  %v4022_v30 = vrot.slane %v2837_v1, 4  ;;  %v1384_v35 = vrot.slane %v1371_v31, 4 }
  0xe2   : > { %1477 = vrot.lane.b32.xlu0 %v3113_v22, %s2285_s8  ;;  %v3143_v23 = vperm.slane %v1173_v52, %v2620_v59  ;;  %v1197_v40 = vsel %vm396_vm1, %v1196_v28, %v2918_v16  ;;  %v1287_v15 = vsel %vm396_vm1, %v2564_v18, %v1286_v13  ;;  %v1396_v47 = vrot.slane %v3116_v42, 4 }
  0xe3   : > { %v669_v3 = vsel %vm396_vm1, %v4022_v30, %v2823_v19  ;;  %v3151_v11 = vperm.slane %v1287_v15, %v2620_v59  ;;  %v3154_v32 = vperm.slane %v1311_v25, %v2620_v59  ;;  %v4024_v2 = vrot.slane %v2572_v17, 4 }
  0xe4   : > { %4023 = vst [vmem:[#allocation46_spill] sm:$0xff] %v3143_v23  ;;  %v1386_v6 = vrot.slane %v1359_v14, 4  ;;  %v1385_v52 = vsel %vm396_vm1, %v1384_v35, %v1359_v14  ;;  %v3162_v28 = vperm.slane %v1309_v33, %v2620_v59  ;;  %v1334_v18 = vrot.slane %v3128_v37, 4 }
  0xe5   : > { %v781_v9 = vsel %vm396_vm1, %v4024_v2, %v2584_v55  ;;  %v804_v0 = vrot.slane %v3087_v56, 4  ;;  %v3167_v13 = vperm.slane %v1197_v40, %v2620_v59  ;;  %v835_v25 = vsel %vm396_vm1, %v815_v62, %v834_v53 }
  0xe6   : > { %4025 = vst [vmem:[#allocation47_spill] sm:$0xff] %v3162_v28  ;;  %v1338_v30 = vrot.slane %v3151_v11, 4  ;;  %v1198_v17 = vrot.slane %v2918_v16, 4  ;;  %v692_v14 = vrot.slane %v3097_v29, 4  ;;  %v1222_v33 = vrot.slane %v3143_v23, 4 }
  0xe7   : > { %4026 = vst [vmem:[#allocation48_spill] sm:$0xff] %v3167_v13  ;;  %v3176_v35 = vperm.slane %v1385_v52, %v2620_v59  ;;  %v1397_v56 = vsel %vm396_vm1, 0.0, %v1396_v47  ;;  %v4027_v53 = vrot.slane %v2823_v19, 4  ;;  %v3186_v16 = vperm.slane %v1163_v8, %v2518_v48 }
  0xe8   : > { %v1339_v40 = vsel %vm396_vm1, %v3154_v32, %v1338_v30  ;;  %v1387_v2 = vsel %vm396_vm1, %v1371_v31, %v1386_v6  ;;  %v1335_v52 = vsel %vm396_vm1, %v3162_v28, %v1334_v18  ;;  %v868_v47 = vrot.slane %v3033_v10, 4 }
  0xe9   : > { %v671_v15 = vsel %vm396_vm1, %v2837_v1, %v4027_v53  ;;  %1557 = vrot.lane.b32.xlu1 %v1397_v56, %s2281_s4  ;;  %v2082_v55 = vpack.i.bf16 %v1339_v40, %v835_v25  ;;  %1617 = vrot.lane.b32.xlu2 %v3176_v35, %s2285_s8  ;;  %v1223_v19 = vsel %vm396_vm1, %v3167_v13, %v1222_v33  ;;  %v4028_v8 = vrot.slane %v2892_v12, 4  ;;  %v4074_v13 = vld [vmem:[#allocation9_spill] sm:$0xff] }
  0xea   : > { %v805_v1 = vsel %vm396_vm1, %v804_v0, %v3041_v60  ;;  %v4029_v6 = vpack.i.bf16 %v3053_v39, %v3057_v44  ;;  %v3208_v10 = vperm.slane %v781_v9, %v2620_v59  ;;  %v1199_v18 = vsel %vm396_vm1, %v3071_v41, %v1198_v17 }
  0xeb   : > { %v695_v31 = vsel %vm396_vm1, %v3097_v29, %v4028_v8  ;;  %v832_v60 = vrot.slane %v815_v62, 4  ;;  %v3216_v0 = vperm.slane %v1387_v2, %v2620_v59  ;;  %v2102_v30 = vpack.i.bf16 %v1223_v19, %v1335_v52 }
  0xec   : > { %2078 = vrot.lane.b32.xlu0 %v4029_v6, %s2281_s4  ;;  %4030 = vst [vmem:[#allocation49_spill] sm:$0xff] %v3208_v10  ;;  %v3213_v25 = vperm.slane %v695_v31, %v2620_v59  ;;  %v3219_v29 = vperm.slane %v669_v3, %v2620_v59  ;;  %v693_v39 = vsel %vm396_vm1, %v692_v14, %v2892_v12  ;;  %v4032_v17 = vrot.slane %v2826_v20, 4 }
  0xed   : > { %v3224_v44 = vperm.slane %v805_v1, %v2620_v59  ;;  %v3227_v9 = vperm.slane %v671_v15, %v2620_v59  ;;  %v3232_v62 = vsel %vm396_vm1, %v832_v60, %v3102_v57  ;;  %v3239_v33 = vperm.slane %v1199_v18, %v2620_v59 }
  0xee   : > { %v720_v41 = vrot.slane %v3213_v25, 4  ;;  %v1175_v3 = vsel %vm396_vm1, %v2846_v27, %v4032_v17  ;;  %v869_v12 = vsel %vm396_vm1, %v868_v47, %v3019_v58  ;;  %v836_v14 = vrot.slane %v2963_v4, 4 }
  0xef   : > { %4031 = vst [vmem:[#allocation50_spill] sm:$0xff] %v3224_v44  ;;  %v830_v56 = vrot.slane %v3208_v10, 4  ;;  %v1336_v40 = vrot.slane %v3154_v32, 4  ;;  %v1340_v20 = vrot.slane %v2976_v5, 4  ;;  %v950_v58 = vrot.slane %v2656_v21, 4 }
  0xf0   : > { %v3248_v57 = vsel %vm396_vm1, %v720_v41, %v3227_v9  ;;  %v3255_v53 = vsel %vm396_vm1, %v836_v14, %v2960_v38  ;;  %v983_v4 = vperm.slane %v2645_v61, %v2620_v59  ;;  %v3262_v32 = vperm.slane %v869_v12, %v2620_v59  ;;  %v4038_v14 = vld [vmem:[#allocation19_spill] sm:$0xff] }
  0xf1   : > { %v2097_v27 = vpack.i.bf16 %v3232_v62, %v3248_v57  ;;  %2103 = vrot.lane.b32.xlu1 %v2102_v30, %s2281_s4  ;;  %v3266_v5 = vsel %vm396_vm1, %v1340_v20, %v2966_v7  ;;  %v4033_v15 = vrot.slane %v2775_v43, 4  ;;  %v4034_v2 = vrot.slane %v2522_v49, 4  ;;  %1657 = vrot.lane.b32.xlu2 %v3216_v0, %s2283_s6 }
  0xf2   : > { %v3279_v61 = vperm.slane %v693_v39, %v2620_v59  ;;  %v1224_v52 = vrot.slane %v3239_v33, 4  ;;  %v951_v43 = vsel %vm396_vm1, %v2623_v51, %v950_v58  ;;  %v718_v49 = vrot.slane %v3219_v29, 4  ;;  %v4037_v39 = vld [vmem:[#allocation39_spill] sm:$0xff]  ;;  %v4071_v58 = vld [vmem:[#allocation28_spill] sm:$0xff] }
  0xf3   : > { %v1063_v38 = vsel %vm396_vm1, %v2772_v45, %v4033_v15  ;;  %v1087_v21 = vsel %vm396_vm1, %v2982_v34, %v4034_v2  ;;  %v1000_v45 = vrot.slane %v983_v4, 4  ;;  %v3295_v19 = vperm.slane %v1175_v3, %v2620_v59 }
  0xf4   : > { %2083 = vrot.lane.b32.xlu0 %v2082_v55, %s2286_s9  ;;  %v3289_v34 = vperm.slane %v1063_v38, %v2620_v59  ;;  %v3292_v47 = vperm.slane %v1087_v21, %v2620_v59  ;;  %v1337_v1 = vsel %vm396_vm1, %v1336_v40, %v3151_v11  ;;  %v959_v51 = vperm.slane %v951_v43, %v2620_v59  ;;  %v4039_v40 = vld [vmem:[#allocation38_spill] sm:$0xff] }
  0xf5   : > { %v4035_v55 = vrot.slane %v2840_v24, 4  ;;  %v4036_v31 = vunpack.i.l.bf16 %v2834_v63  ;;  %v831_v18 = vsel %vm396_vm1, %v3224_v44, %v830_v56  ;;  %v892_v60 = vrot.slane %v3262_v32, 4 }
  0xf6   : > { %v1112_v11 = vrot.slane %v3292_v47, 4  ;;  %v1322_v30 = vrot.slane %v2952_v36, 4  ;;  %v818_v41 = vrot.slane %v4037_v39, 4  ;;  %v719_v17 = vsel %vm396_vm1, %v3279_v61, %v718_v49  ;;  %v4041_v49 = vld [vmem:[#allocation13_spill] sm:$0xff] }
  0xf7   : > { %v3304_v8 = vsel %vm396_vm1, %v4035_v55, %v2812_v46  ;;  %v659_v6 = vsel %vm396_vm1, %v4036_v31, %v2915_v50  ;;  %v1225_v3 = vsel %vm396_vm1, %v1224_v52, %v3295_v19  ;;  %v3321_v50 = vsel %vm396_vm1, %v1000_v45, %v959_v51  ;;  %v4040_v52 = vld [vmem:[#allocation30_spill] sm:$0xff]  ;;  %v4044_v55 = vld [vmem:[#allocation36_spill] sm:$0xff] }
  0xf8   : > { %v2107_v63 = vpack.i.bf16 %v1225_v3, %v1337_v1  ;;  %v3325_v12 = vsel %vm396_vm1, %v1112_v11, %v3289_v34  ;;  %v498_v56 = vrot.slane %v4038_v14, 4  ;;  %v706_v36 = vrot.slane %v4039_v40, 4  ;;  %v4043_v1 = vld [vmem:[#allocation17_spill] sm:$0xff]  ;;  %v4047_v11 = vld [vmem:[#allocation15_spill] sm:$0xff] }
  0xf9   : > { %v2092_v20 = vpack.i.bf16 %v831_v18, %v719_v17  ;;  %v1002_v15 = vrot.slane %v959_v51, 4  ;;  %v3333_v2 = vperm.slane %v659_v6, %v2518_v48  ;;  %v893_v21 = vsel %vm396_vm1, 0.0, %v892_v60  ;;  %v4045_v6 = vld [vmem:[#allocation14_spill] sm:$0xff]  ;;  %v4048_v60 = vld [vmem:[#allocation37_spill] sm:$0xff] }
  0xfa   : > { %2108 = vrot.lane.b32.xlu1 %v2107_v63, %s2282_s5  ;;  %v3339_v43 = vsel %vm396_vm1, %v4040_v52, %v498_v56  ;;  %v4042_v45 = vrot.slane %v4041_v49, 4  ;;  %v819_v31 = vsel %vm396_vm1, %v4044_v55, %v818_v41  ;;  %v4046_v18 = vrot.slane %v4045_v6, 4  ;;  %v4050_v49 = vld [vmem:[#allocation44_spill] sm:$0xff] }
  0xfb   : > { %2093 = vrot.lane.b32.xlu2 %v2092_v20, %s2281_s4  ;;  %v1323_v17 = vsel %vm396_vm1, %v4048_v60, %v1322_v30  ;;  %v827_v63 = vperm.slane %v819_v31, %v2620_v59  ;;  %v4049_v41 = vrot.slane %v2923_v54, 4  ;;  %v896_v52 = vrot.slane %v3113_v22, 4 }
  0xfc   : > { %v795_v51 = vsel %vm396_vm1, %v4043_v1, %v4042_v45  ;;  %v1299_v39 = vsel %vm396_vm1, %v4047_v11, %v4046_v18  ;;  %1417 = vrot.lane.b32.xlu0 %v893_v21, %s2281_s4  ;;  %v1331_v56 = vperm.slane %v1323_v17, %v2620_v59  ;;  %v894_v30 = vrot.slane %v4050_v49, 4  ;;  %v4053_v49 = vld [vmem:[#allocation7_spill] sm:$0xff]  ;;  %s1837_s4 = sshll.u32 %s163_s30, 4  ;;  %s1838_s4 = int_to_ptr.vmem [resolvable:$true] %s1837_s4 }
  0xfd   : > { %v803_v3 = vperm.slane %v795_v51, %v2620_v59  ;;  %v1307_v14 = vperm.slane %v1299_v39, %v2620_v59  ;;  %v3363_v20 = vsel %vm396_vm1, %v3186_v16, %v4049_v41  ;;  %v3368_v21 = vsel %vm396_vm1, %v983_v4, %v1002_v15 }
  0xfe   : > { %v840_v51 = vrot.slane %v827_v63, 4  ;;  %v1344_v55 = vrot.slane %v1331_v56, 4  ;;  %v1398_v31 = vrot.slane %v3110_v26, 4  ;;  %v1402_v6 = vrot.slane %v3216_v0, 4 }
  0xff   : > { %v842_v45 = vrot.slane %v803_v3, 4  ;;  %v1346_v1 = vrot.slane %v1307_v14, 4  ;;  %v1400_v18 = vrot.slane %v3176_v35, 4  ;;  %v704_v26 = vrot.slane %v3333_v2, 4  ;;  %v4069_v35 = vld [vmem:[#allocation26_spill] sm:$0xff] }
 0x100   : > { %v3382_v15 = vsel %vm396_vm1, %v840_v51, %v803_v3  ;;  %v3385_v39 = vsel %vm396_vm1, %v1344_v55, %v1307_v14  ;;  %v897_v0 = vsel %vm396_vm1, 0.0, %v896_v52  ;;  %v3395_v17 = vsel %vm396_vm1, %v3333_v2, %v706_v36  ;;  %v4051_v14 = vld [vmem:[#allocation5_spill] sm:$0xff]  ;;  %v2210_v52 = vld [vmem:[%s2362_s28 + $0x48] sm:$0xff]  ;;  %v4055_v51 = vld [vmem:[#allocation20_spill] sm:$0xff] }
 0x101   : > { %v3376_v11 = vsel %vm396_vm1, %v827_v63, %v842_v45  ;;  %v3379_v4 = vsel %vm396_vm1, %v1331_v56, %v1346_v1  ;;  %v1114_v3 = vrot.slane %v3289_v34, 4  ;;  %v2209_v63 = vld [vmem:[%s2362_s28 + $0x30] sm:$0xff]  ;;  %v4052_v56 = vrot.slane %v4051_v14, 4  ;;  %v4056_v55 = vld [vmem:[#allocation25_spill] sm:$0xff] }
 0x102   : > { %1497 = vrot.lane.b32.xlu1 %v897_v0, %s2284_s7  ;;  %v4054_v45 = vrot.slane %v4053_v49, 4  ;;  %v895_v36 = vsel %vm396_vm1, 0.0, %v894_v30  ;;  %v1399_v34 = vsel %vm396_vm1, 0.0, %v1398_v31  ;;  %v4057_v0 = vrot.slane %v4056_v55, 4  ;;  %v2211_v31 = vld [vmem:[%s2362_s28 + $0x38] sm:$0xff] }
 0x103   : > { %v399_v41 = vsel %vm396_vm1, %v2209_v63, %v4052_v56  ;;  %2098 = vrot.lane.b32.xlu2 %v2097_v27, %s2282_s5  ;;  %v1403_v14 = vsel %vm396_vm1, 0.0, %v1402_v6  ;;  %v3423_v56 = vsel %vm396_vm1, 0.0, %v1400_v18  ;;  %v3427_v62 = vsel %vm396_vm1, %v3292_v47, %v1114_v3  ;;  %v4060_v18 = vld [vmem:[#allocation8_spill] sm:$0xff] }
 0x104   : > { %v411_v1 = vsel %vm396_vm1, %v2210_v52, %v4054_v45  ;;  %v481_v63 = vsel %vm396_vm1, %v4057_v0, %v4055_v51  ;;  %1457 = vrot.lane.b32.xlu0 %v895_v36, %s2286_s9  ;;  %v3433_v27 = vperm.slane %v399_v41, %v2518_v48  ;;  %v4058_v52 = vld [vmem:[#allocation6_spill] sm:$0xff]  ;;  %v2212_v45 = vld [vmem:[%s2362_s28 + $0x50] sm:$0xff]  ;;  %v722_v47 = vrot.slane %v3227_v9, 4  ;;  %v4063_v41 = vld [vmem:[#allocation24_spill] sm:$0xff] }
 0x105   : > { %v3414_v2 = vperm.slane %v411_v1, %v2518_v48  ;;  %v3430_v57 = vperm.slane %v481_v63, %v2620_v59  ;;  %v4059_v49 = vrot.slane %v4058_v52, 4  ;;  %v4061_v1 = vrot.slane %v4060_v18, 4  ;;  %v4062_v0 = vld [vmem:[#allocation18_spill] sm:$0xff]  ;;  %v4066_v18 = vld [vmem:[#allocation43_spill] sm:$0xff] }
 0x106   : > { %v4064_v63 = vrot.slane %v4063_v41, 4  ;;  %v4065_v60 = vrot.slane %v2812_v46, 4  ;;  %v1226_v52 = vrot.slane %v3295_v19, 4  ;;  %v4070_v38 = vrot.slane %v4069_v35, 4 }
 0x107   : > { %v456_v30 = vrot.slane %v3414_v2, 4  ;;  %v903_v6 = vsel %vm396_vm1, %v2211_v31, %v4059_v49  ;;  %v915_v36 = vsel %vm396_vm1, %v2212_v45, %v4061_v1  ;;  %v500_v9 = vrot.slane %v3430_v57, 4 }
 0x108   : > { %v3446_v3 = vperm.slane %v915_v36, %v2518_v48  ;;  %v985_v22 = vsel %vm396_vm1, %v4064_v63, %v4062_v0  ;;  %v3456_v31 = vsel %vm396_vm1, %v2840_v24, %v4065_v60  ;;  %v898_v1 = vrot.slane %v4066_v18, 4  ;;  %v4067_v60 = vld [vmem:[#allocation10_spill] sm:$0xff]  ;;  %v4068_v63 = vld [vmem:[#allocation29_spill] sm:$0xff]  ;;  %v4072_v18 = vld [vmem:[#allocation27_spill] sm:$0xff] }
 0x109   : > { %v457_v49 = vsel %vm396_vm1, %v456_v30, %v3433_v27  ;;  %v3463_v45 = vperm.slane %v985_v22, %v2620_v59  ;;  %v3470_v46 = vperm.slane %v903_v6, %v2518_v48  ;;  %v543_v30 = vperm.slane %v4067_v60, %v2518_v48 }
 0x10a   : > { %v3467_v36 = vperm.slane %v457_v49, %v2620_v59  ;;  %v960_v24 = vrot.slane %v3446_v3, 4  ;;  %v569_v22 = vsel %vm396_vm1, %v4070_v38, %v4068_v63  ;;  %v4073_v7 = vrot.slane %v4072_v18, 4  ;;  %1677 = vrot.lane.b32.xlu1 %v1403_v14, %s2287_s10 }
 0x10b   : > { %v1004_v19 = vrot.slane %v3463_v45, 4  ;;  %v723_v6 = vsel %vm396_vm1, %v3213_v25, %v722_v47  ;;  %v705_v23 = vsel %vm396_vm1, %v704_v26, %v4039_v40  ;;  %v1047_v38 = vperm.slane %v4074_v13, %v2518_v48  ;;  %1597 = vrot.lane.b32.xlu2 %v1399_v34, %s2286_s9  ;;  %v4075_v47 = vld [vmem:[#allocation11_spill] sm:$0xff]  ;;  %v4078_v34 = vld [vmem:[#allocation12_spill] sm:$0xff] }
 0x10c   : > { %v1073_v49 = vsel %vm396_vm1, %v4073_v7, %v4071_v58  ;;  %v961_v60 = vsel %vm396_vm1, %v960_v24, %v3470_v46  ;;  %v1227_v7 = vsel %vm396_vm1, %v3239_v33, %v1226_v52  ;;  %v3498_v14 = vsel %vm396_vm1, %v500_v9, %v3467_v36 }
 0x10d   : > { %v967_v25 = vperm.slane %v961_v60, %v2620_v59  ;;  %v4076_v10 = vrot.slane %v4075_v47, 4  ;;  %v4077_v26 = vpack.i.bf16 %v3266_v5, %v3255_v53  ;;  %v575_v48 = vperm.slane %v569_v22, %v2620_v59 }
 0x10e   : > { %v1079_v33 = vperm.slane %v1073_v49, %v2620_v59  ;;  %v4079_v52 = vrot.slane %v4078_v34, 4  ;;  %v4080_v60 = vrot.slane %v4068_v63, 4  ;;  %v594_v5 = vrot.slane %v543_v30, 4 }
 0x10f   : > { %v593_v40 = vsel %vm396_vm1, %v4076_v10, %v543_v30  ;;  %2113 = vrot.lane.b32.xlu0 %v4077_v26, %s2285_s8  ;;  %v3515_v24 = vsel %vm396_vm1, %v1004_v19, %v967_v25  ;;  %v2117_v22 = vpack.i.bf16 %v1227_v7, %v723_v6  ;;  %v4081_v26 = vld [vmem:[#allocation33_spill] sm:$0xff]  ;;  %v899_v19 = vsel %vm396_vm1, 0.0, %v898_v1 }
 0x110   : > { %v599_v13 = vperm.slane %v593_v40, %v2620_v59  ;;  %v1097_v9 = vsel %vm396_vm1, %v4079_v52, %v1047_v38  ;;  %v571_v53 = vsel %vm396_vm1, %v4069_v35, %v4080_v60  ;;  %v4082_v40 = vld [vmem:[#allocation35_spill] sm:$0xff]  ;;  %v2177_v52 = vpack.i.bf16 %v3515_v24, %v3498_v14  ;;  %v4097_v24 = vld [vmem:[#allocation16_spill] sm:$0xff] }
 0x111   : > { %v1103_v10 = vperm.slane %v1097_v9, %v2620_v59  ;;  %v4083_v37 = vrot.slane %v4082_v40, 4  ;;  %v579_v9 = vperm.slane %v571_v53, %v2620_v59  ;;  %v595_v63 = vsel %vm396_vm1, %v4075_v47, %v594_v5 }
 0x112   : > { %v612_v44 = vrot.slane %v599_v13, 4  ;;  %v3533_v35 = vperm.slane %v705_v23, %v2620_v59  ;;  %v1098_v7 = vrot.slane %v1047_v38, 4  ;;  %v603_v60 = vperm.slane %v595_v63, %v2620_v59 }
 0x113   : > { %v1185_v49 = vsel %vm396_vm1, %v4083_v37, %v4081_v26  ;;  %v1116_v28 = vrot.slane %v1103_v10, 4  ;;  %v4084_v37 = vrot.slane %v4071_v58, 4  ;;  %v618_v53 = vrot.slane %v579_v9, 4  ;;  %1637 = vrot.lane.b32.xlu2 %v3423_v56, %s2284_s7 }
 0x114   : > { %v3536_v30 = vsel %vm396_vm1, %v612_v44, %v575_v48  ;;  %v4085_v23 = vpack.i.bf16 %v3321_v50, %v3325_v12  ;;  %v687_v44 = vperm.slane %v3304_v8, %v2620_v59  ;;  %v4086_v58 = vrot.slane %v3186_v16, 4 }
 0x115   : > { %v1075_v6 = vsel %vm396_vm1, %v4072_v18, %v4084_v37  ;;  %v3543_v1 = vsel %vm396_vm1, %v1116_v28, %v1079_v33  ;;  %v1099_v38 = vsel %vm396_vm1, %v4078_v34, %v1098_v7  ;;  %v1191_v50 = vperm.slane %v1185_v49, %v2620_v59 }
 0x116   : > { %v1083_v47 = vperm.slane %v1075_v6, %v2620_v59  ;;  %2133 = vrot.lane.b32.xlu1 %v4085_v23, %s2282_s5  ;;  %v1209_v18 = vsel %vm396_vm1, %v4086_v58, %v2923_v54  ;;  %v2152_v28 = vpack.i.bf16 %v3543_v1, %v3536_v30  ;;  %v3565_v12 = vsel %vm396_vm1, %v603_v60, %v618_v53  ;;  %s1839_s5 = sshll.u32 %s1835_s29, 4  ;;  %s1840_s5 = int_to_ptr.hbm [resolvable:$true] %s1839_s5 }
 0x117   : > { %v1107_v8 = vperm.slane %v1099_v38, %v2620_v59  ;;  %2118 = vrot.lane.b32.xlu0 %v2117_v22, %s2286_s9  ;;  %v724_v54 = vrot.slane %v3533_v35, 4  ;;  %v614_v16 = vrot.slane %v575_v48, 4  ;;  %v1118_v63 = vrot.slane %v1079_v33, 4 }
 0x118   : > { %v1122_v5 = vrot.slane %v1083_v47, 4  ;;  %v502_v37 = vrot.slane %v3467_v36, 4  ;;  %v1215_v34 = vperm.slane %v1209_v18, %v2620_v59  ;;  %v1006_v49 = vrot.slane %v967_v25, 4 }
 0x119   : > { %v616_v6 = vrot.slane %v603_v60, 4  ;;  %v3578_v53 = vsel %vm396_vm1, %v599_v13, %v614_v16  ;;  %v3581_v22 = vsel %vm396_vm1, %v1103_v10, %v1118_v63  ;;  %v1120_v60 = vrot.slane %v1107_v8, 4 }
 0x11a   : > { %v3573_v56 = vsel %vm396_vm1, %v1107_v8, %v1122_v5  ;;  %v3585_v48 = vsel %vm396_vm1, %v3430_v57, %v502_v37  ;;  %v2167_v36 = vpack.i.bf16 %v3581_v22, %v3578_v53  ;;  %v3591_v25 = vsel %vm396_vm1, %v3463_v45, %v1006_v49 }
 0x11b   : > { %v2192_v7 = vpack.i.bf16 %v3573_v56, %v3565_v12  ;;  %v3594_v33 = vsel %vm396_vm1, %v616_v6, %v579_v9  ;;  %v2187_v13 = vpack.i.bf16 %v3591_v25, %v3585_v48  ;;  %v458_v10 = vrot.slane %v3433_v27, 4  ;;  %1537 = vrot.lane.b32.xlu2 %v899_v19, %s2287_s10  ;;  %v4099_v25 = vld [vmem:[#allocation42_spill] sm:$0xff] }
 0x11c   : > { %v4087_v23 = vrot.slane %v4055_v51, 4  ;;  %v962_v58 = vrot.slane %v3470_v46, 4  ;;  %v1228_v18 = vrot.slane %v1215_v34, 4  ;;  %v3605_v45 = vsel %vm396_vm1, %v1120_v60, %v1083_v47 }
 0x11d   : > { %v4088_v38 = vrot.slane %v4062_v0, 4  ;;  %v4089_v51 = vpack.i.bf16 %v3379_v4, %v3376_v11  ;;  %v459_v27 = vsel %vm396_vm1, %v3414_v2, %v458_v10  ;;  %v716_v0 = vrot.slane %v3279_v61, 4 }
 0x11e   : > { %v483_v57 = vsel %vm396_vm1, %v4056_v55, %v4087_v23  ;;  %v2182_v55 = vpack.i.bf16 %v3605_v45, %v3594_v33  ;;  %v963_v46 = vsel %vm396_vm1, %v3446_v3, %v962_v58  ;;  %v4090_v5 = vpack.i.bf16 %v3385_v39, %v3382_v15  ;;  %v4092_v58 = vld [vmem:[#allocation34_spill] sm:$0xff] }
 0x11f   : > { %v491_v9 = vperm.slane %v483_v57, %v2620_v59  ;;  %v987_v8 = vsel %vm396_vm1, %v4063_v41, %v4088_v38  ;;  %2148 = vrot.lane.b32.xlu1 %v4089_v51, %s2287_s10  ;;  %v467_v41 = vperm.slane %v459_v27, %v2620_v59  ;;  %v971_v11 = vperm.slane %v963_v46, %v2620_v59  ;;  %v4094_v51 = vld [vmem:[#allocation23_spill] sm:$0xff] }
 0x120   : > { %v995_v47 = vperm.slane %v987_v8, %v2620_v59  ;;  %2128 = vrot.lane.b32.xlu0 %v4090_v5, %s2283_s6  ;;  %v725_v2 = vsel %vm396_vm1, %v724_v54, %v687_v44  ;;  %v726_v16 = vrot.slane %v687_v44, 4  ;;  %v1230_v3 = vrot.slane %v1191_v50, 4 }
 0x121   : > { %v504_v4 = vrot.slane %v491_v9, 4  ;;  %v1229_v37 = vsel %vm396_vm1, %v1228_v18, %v1191_v50  ;;  %v506_v61 = vrot.slane %v467_v41, 4  ;;  %v1010_v49 = vrot.slane %v971_v11, 4 }
 0x122   : > { %v1008_v63 = vrot.slane %v995_v47, 4  ;;  %v727_v6 = vsel %vm396_vm1, %v3533_v35, %v726_v16  ;;  %v1231_v60 = vsel %vm396_vm1, %v1215_v34, %v1230_v3  ;;  %v715_v15 = vperm.slane %v3395_v17, %v2620_v59  ;;  %v4098_v16 = vld [vmem:[#allocation32_spill] sm:$0xff] }
 0x123   : > { %v505_v19 = vsel %vm396_vm1, %v504_v4, %v467_v41  ;;  %v1219_v44 = vperm.slane %v3363_v20, %v2620_v59  ;;  %v507_v54 = vsel %vm396_vm1, %v491_v9, %v506_v61  ;;  %v1011_v50 = vsel %vm396_vm1, %v995_v47, %v1010_v49  ;;  %v4096_v47 = vld [vmem:[#allocation22_spill] sm:$0xff] }
 0x124   : > { %v1009_v39 = vsel %vm396_vm1, %v1008_v63, %v971_v11  ;;  %v2202_v23 = vpack.i.bf16 %v1011_v50, %v507_v54  ;;  %v2122_v57 = vpack.i.bf16 %v1229_v37, %v725_v2  ;;  %v4091_v35 = vpack.i.bf16 %v3368_v21, %v3339_v43 }
 0x125   : > { %v2197_v10 = vpack.i.bf16 %v1009_v39, %v505_v19  ;;  %v2142_v34 = vpack.i.bf16 %v1231_v60, %v727_v6  ;;  %v610_v17 = vrot.slane %v4092_v58, 4  ;;  %v4093_v18 = vrot.slane %v4081_v26, 4 }
 0x126   : > { %2123 = vrot.lane.b32.xlu2 %v2122_v57, %s2285_s8  ;;  %v728_v9 = vrot.slane %v715_v15, 4  ;;  %v1232_v38 = vrot.slane %v1219_v44, 4  ;;  %v717_v8 = vsel %vm396_vm1, %v716_v0, %v3219_v29  ;;  %v691_v43 = vperm.slane %v3456_v31, %v2620_v59  ;;  %v4102_v57 = vld [vmem:[#allocation40_spill] sm:$0xff] }
 0x127   : > { %2163 = vrot.lane.b32.xlu1 %v4091_v35, %s2286_s9  ;;  %v1187_v20 = vsel %vm396_vm1, %v4082_v40, %v4093_v18  ;;  %v611_v26 = vsel %vm396_vm1, %v4094_v51, %v610_v17  ;;  %v604_v0 = vrot.slane %v4096_v47, 4  ;;  %v1108_v33 = vrot.slane %v4099_v25, 4 }
 0x128   : > { %2143 = vrot.lane.b32.xlu0 %v2142_v34, %s2284_s7  ;;  %v1195_v21 = vperm.slane %v1187_v20, %v2620_v59  ;;  %v729_v27 = vsel %vm396_vm1, %v728_v9, %v691_v43  ;;  %v2137_v46 = vpack.i.bf16 %v3427_v62, %v611_v26  ;;  %v4095_v59 = vld [vmem:[#allocation31_spill] sm:$0xff]  ;;  %v730_v41 = vrot.slane %v691_v43, 4 }
 0x129   : > { %v492_v31 = vrot.slane %v4095_v59, 4  ;;  %v605_v3 = vsel %vm396_vm1, %v604_v0, %v4098_v16  ;;  %v1109_v35 = vsel %vm396_vm1, %v1108_v33, %v4102_v57 }
 0x12a   : > { %v1233_v40 = vsel %vm396_vm1, %v1232_v38, %v1195_v21  ;;  %v1234_v11 = vrot.slane %v1195_v21, 4  ;;  %v731_v62 = vsel %vm396_vm1, %v715_v15, %v730_v41 }
 0x12b   : > { %v2157_v29 = vpack.i.bf16 %v1233_v40, %v729_v27  ;;  %v2069_v4 = vpop.permute.xlu1 %2068 }
 0x12c   : > { %v1235_v5 = vsel %vm396_vm1, %v1219_v44, %v1234_v11  ;;  %v2071_v2 = vunpack.i.h.bf16 %v2069_v4  ;;  %v2070_v14 = vunpack.i.l.bf16 %v2069_v4 }
 0x12d   : > { %v2172_v61 = vpack.i.bf16 %v1235_v5, %v731_v62 }
 0x12e   : > { %2138 = vrot.lane.b32.xlu2 %v2137_v46, %s2286_s9  ;;  %v1686_v37 = vsel %vm1684_vm3, %v605_v3, %v2071_v2  ;;  %v4104_v3 = vld [vmem:[#allocation50_spill] sm:$0xff] }
 0x12f   : > { %2178 = vrot.lane.b32.xlu1 %v2177_v52, %s2285_s8  ;;  %v493_v52 = vsel %vm396_vm1, %v492_v31, %v4097_v24 }
 0x130   : > { %2158 = vrot.lane.b32.xlu0 %v2157_v29, %s2283_s6  ;;  %v1685_v63 = vsel %vm1684_vm3, %v493_v52, %v2070_v14  ;;  %v4103_v14 = vld [vmem:[#allocation47_spill] sm:$0xff] }
 0x131   : > { %v1332_v24 = vrot.slane %v4103_v14, 4 }
 0x133   : > { %v2074_v49 = vpop.permute.xlu1 %2073 }
 0x134   : > { %v2076_v19 = vunpack.i.h.bf16 %v2074_v49  ;;  %v2075_v6 = vunpack.i.l.bf16 %v2074_v49 }
 0x136   : > { %2153 = vrot.lane.b32.xlu2 %v2152_v28, %s2285_s8  ;;  %v3691_v60 = vsel %vm1690_vm4, %v1685_v63, %v2075_v6  ;;  %v3694_v15 = vsel %vm1690_vm4, %v1686_v37, %v2076_v19  ;;  %v828_v63 = vrot.slane %v4104_v3, 4 }
 0x137   : > { %2193 = vrot.lane.b32.xlu1 %v2192_v7, %s2287_s10 }
 0x138   : > { %2173 = vrot.lane.b32.xlu0 %v2172_v61, %s2287_s10 }
 0x13b   : > { %v1578_v30 = vpop.permute.xlu2 %1577 }
 0x13e   : > { %2168 = vrot.lane.b32.xlu2 %v2167_v36, %s2284_s7 }
 0x140   : > { %2188 = vrot.lane.b32.xlu0 %v2187_v13, %s2284_s7  ;;  %v4100_v13 = vld [vmem:[#allocation41_spill] sm:$0xff] }
 0x141   : > { %v996_v45 = vrot.slane %v4100_v13, 4 }
 0x143   : > { %v1618_v1 = vpop.permute.xlu2 %1617 }
 0x146   : > { %2183 = vrot.lane.b32.xlu2 %v2182_v55, %s2283_s6 }
 0x148   : > { %2203 = vrot.lane.b32.xlu0 %v2202_v23, %s2287_s10  ;;  %s2233_s10 = scalar_lea.hbm %s3889_s3, 32 }
 0x14a   : > { %v1518_v28 = vpop.permute.xlu1 %1517 }
 0x14b   : > { %v1658_v12 = vpop.permute.xlu2 %1657 }
 0x14c   : > { %v1438_v56 = vpop.permute.xlu0 %1437 }
 0x14e   : > { %2198 = vrot.lane.b32.xlu2 %v2197_v10, %s2283_s6  ;;  %v4101_v10 = vld [vmem:[#allocation21_spill] sm:$0xff]  ;;  %s2227_s6 = sshra.s32 %s1840_s5, 4  ;;  %s2228_s6 = int_to_ptr.hbm [resolvable:$true] %s2227_s6 }
 0x14f   : > { %v997_v23 = vsel %vm396_vm1, %v996_v45, %v4101_v10  ;;  %s2229_s7 = scalar_lea.hbm %s2228_s6, 16  ;;  %p2234_p0 = scmp.lt.s32.totalorder %s2228_s6, %s3889_s3 }
 0x150   : > { %p2230_p11 = scmp.ne.s32.totalorder %s2228_s6, %s2229_s7  ;;  %p2235_p1 = scmp.lt.s32.totalorder %s2233_s10, %s2229_s7 }
 0x152   : > { %p2231_p12 = pnand %p2230_p11, %p2347_p5  ;;  %p2236_p2 = por %p2235_p1, %p2234_p0 }
 0x153   : > { %v3710_v7 = vpop.permute.xlu1 %2088 }
 0x154   : > { %v1478_v48 = vpop.permute.xlu0 %1477  ;;  %v2090_v57 = vunpack.i.l.bf16 %v3710_v7  ;;  %p2232_p13 = pneg %p2231_p12 }
 0x155   : > { %v3712_v53 = vpop.permute.xlu2 %2093 }
 0x156   : > { %v2095_v22 = vunpack.i.l.bf16 %v3712_v53  ;;  %v2096_v49 = vunpack.i.h.bf16 %v3712_v53  ;;  %p2237_p3 = pnand %p2236_p2, %p2232_p13 }
 0x158   : > { %v3716_v36 = vsel %vm1684_vm3, %v717_v8, %v2095_v22 }
 0x15b   : > { %v1558_v55 = vpop.permute.xlu1 %1557 }
 0x15c   : > { %v1730_v43 = vsel %vm1684_vm3, %v3116_v42, %v1558_v55 }
 0x15d   : > { %v3720_v39 = vpop.permute.xlu2 %2098  ;;  %v1735_v51 = vsel %vm1690_vm4, %v1730_v43, %v1578_v30  ;;  %v4105_v30 = vld [vmem:[#allocation45_spill] sm:$0xff] }
 0x15e   : > { %v2079_v44 = vpop.permute.xlu0 %2078  ;;  %v2101_v6 = vunpack.i.h.bf16 %v3720_v39 }
 0x15f   : > { %v2081_v54 = vunpack.i.h.bf16 %v2079_v44  ;;  %v2080_v50 = vunpack.i.l.bf16 %v2079_v44 }
 0x161   : > { %v3727_v34 = vsel %vm1684_vm3, %v997_v23, %v2081_v54  ;;  %v3730_v58 = vsel %vm1684_vm3, %v1109_v35, %v2080_v50  ;;  %v2091_v23 = vunpack.i.h.bf16 %v3710_v7 }
 0x163   : > { %v3732_v17 = vpop.permute.xlu1 %2103 }
 0x164   : > { %v2105_v52 = vunpack.i.l.bf16 %v3732_v17 }
 0x165   : > { %v1598_v18 = vpop.permute.xlu2 %1597 }
 0x166   : > { %v2084_v20 = vpop.permute.xlu0 %2083  ;;  %v1740_v27 = vsel %vm1696_vm5, %v1735_v51, %v1598_v18 }
 0x167   : > { %v1745_v31 = vsel %vm1702_vm6, %v1740_v27, %v1618_v1  ;;  %v1333_v1 = vsel %vm396_vm1, %v1332_v24, %v4105_v30  ;;  %v2086_v45 = vunpack.i.h.bf16 %v2084_v20 }
 0x16c   : > { %v3734_v9 = vpop.permute.xlu1 %2108 }
 0x16d   : > { %v1638_v38 = vpop.permute.xlu2 %1637  ;;  %v2110_v37 = vunpack.i.l.bf16 %v3734_v9 }
 0x16e   : > { %v1418_v8 = vpop.permute.xlu0 %1417 }
 0x16f   : > { %v1689_v21 = vsel %vm1684_vm3, %v3262_v32, %v1418_v8  ;;  %v1750_v32 = vsel %vm1708_vm7, %v1745_v31, %v1638_v38  ;;  %v4107_v31 = vld [vmem:[#allocation48_spill] sm:$0xff] }
 0x170   : > { %v1695_v46 = vsel %vm1690_vm4, %v1689_v21, %v1438_v56  ;;  %v1755_v4 = vsel %vm1714_vm9, %v1750_v32, %v1658_v12  ;;  %v2085_v12 = vunpack.i.l.bf16 %v2084_v20  ;;  %v4106_v56 = vld [vmem:[#allocation49_spill] sm:$0xff] }
 0x171   : > { %v829_v22 = vsel %vm396_vm1, %v828_v63, %v4106_v56  ;;  %v1762_v32 = vld [vmem:[%s3888_s2] sm:$0xff] }
 0x172   : > { %v1688_v13 = vsel %vm1684_vm3, %v829_v22, %v2096_v49 }
 0x173   : > { %v1694_v53 = vsel %vm1690_vm4, %v1688_v13, %v2101_v6 }
 0x174   : > { %v1498_v26 = vpop.permute.xlu1 %1497  ;;  %v1700_v55 = vsel %vm1696_vm5, %v1694_v53, %v2085_v12 }
 0x175   : > { %v1538_v40 = vpop.permute.xlu2 %1537 }
 0x176   : > { %v1458_v29 = vpop.permute.xlu0 %1457 }
 0x177   : > { %v1701_v59 = vsel %vm1696_vm5, %v1695_v46, %v1458_v29 }
 0x178   : > { %v1707_v42 = vsel %vm1702_vm6, %v1701_v59, %v1478_v48 }
 0x179   : > { %v1713_v47 = vsel %vm1708_vm7, %v1707_v42, %v1498_v26  ;;  %v1220_v42 = vrot.slane %v4107_v31, 4 }
 0x17a   : > { %v1719_v0 = vsel %vm1714_vm9, %v1713_v47, %v1518_v28  ;;  %v1729_v28 = vsel %vm1684_vm3, %v1333_v1, %v2105_v52  ;;  %v2106_v47 = vunpack.i.h.bf16 %v3732_v17  ;;  %v4108_v52 = vld [vmem:[#allocation46_spill] sm:$0xff] }
 0x17b   : > { %v1725_v41 = vsel %vm1720_vm8, %v1719_v0, %v1538_v40  ;;  %v1734_v48 = vsel %vm1690_vm4, %v1729_v28, %v2110_v37  ;;  %v1221_v3 = vsel %vm396_vm1, %v1220_v42, %v4108_v52 }
 0x17c   : > { %1905 = vmatpush.msk.msra.mxu0 %vm1772_vm10, %v1725_v41  ;;  %v1678_v11 = vpop.permute.xlu1 %1677  ;;  %v1739_v44 = vsel %vm1696_vm5, %v1734_v48, %v2086_v45  ;;  %v1728_v37 = vsel %vm1684_vm3, %v1221_v3, %v2106_v47 }
 0x17d   : > { %v1760_v5 = vsel %vm1720_vm8, %v1755_v4, %v1678_v11  ;;  %v2288_v11 = vmov 0   ;;  %v2100_v4 = vunpack.i.l.bf16 %v3720_v39 }
 0x17e   : > { %1907 = vmatpush.msk.msra.mxu1 %vm1772_vm10, %v1760_v5  ;;  %2207 = vset.pattern.permute.xlu1 %v2288_v11  ;;  %v2111_v5 = vunpack.i.h.bf16 %v3734_v9 }
 0x17f   : > { %2208 = vset.pattern.permute.xlu0 %v2288_v11  ;;  %1765 = vperm.xlu1 %2207, %v1762_v32   ;;  %v1693_v39 = vsel %vm1690_vm4, %v3716_v36, %v2100_v4 }
 0x180   : > { %v3751_v62 = vpop.permute.xlu2 %2123  ;;  %v1733_v9 = vsel %vm1690_vm4, %v1728_v37, %v2111_v5 }
 0x181   : > { %v2114_v2 = vpop.permute.xlu0 %2113  ;;  %v2126_v28 = vunpack.i.h.bf16 %v3751_v62 }
 0x182   : > { %v2116_v25 = vunpack.i.h.bf16 %v2114_v2  ;;  %v2115_v33 = vunpack.i.l.bf16 %v2114_v2 }
 0x184   : > { %v1706_v50 = vsel %vm1702_vm6, %v1700_v55, %v2115_v33  ;;  %v1744_v10 = vsel %vm1702_vm6, %v1739_v44, %v2116_v25 }
 0x185   : > { %v1712_v21 = vsel %vm1708_vm7, %v1706_v50, %v2090_v57  ;;  %v1749_v51 = vsel %vm1708_vm7, %v1744_v10, %v2091_v23 }
 0x188   : > { %v3756_v16 = vpop.permute.xlu1 %2133  ;;  %v3760_v61 = vpop.permute.xlu2 %2138 }
 0x189   : > { %v2119_v19 = vpop.permute.xlu0 %2118  ;;  %v2135_v0 = vunpack.i.l.bf16 %v3756_v16  ;;  %v2141_v17 = vunpack.i.h.bf16 %v3760_v61  ;;  %v2140_v63 = vunpack.i.l.bf16 %v3760_v61  ;;  %v2125_v61 = vunpack.i.l.bf16 %v3751_v62 }
 0x18a   : > { %v2121_v2 = vunpack.i.h.bf16 %v2119_v19  ;;  %v2120_v14 = vunpack.i.l.bf16 %v2119_v19 }
 0x18b   : > { %v1732_v49 = vsel %vm1690_vm4, %v3730_v58, %v2135_v0  ;;  %v1698_v12 = vsel %vm1696_vm5, %v3694_v15, %v2140_v63 }
 0x18c   : > { %v1699_v19 = vsel %vm1696_vm5, %v1693_v39, %v2120_v14  ;;  %v1738_v6 = vsel %vm1696_vm5, %v1733_v9, %v2121_v2  ;;  %v1737_v58 = vsel %vm1696_vm5, %v1732_v49, %v2141_v17  ;;  %v1761_v39 = vld [vmem:[%s3887_s1] sm:$0xff] }
 0x18d   : > { %v1705_v53 = vsel %vm1702_vm6, %v1699_v19, %v2125_v61  ;;  %v1743_v55 = vsel %vm1702_vm6, %v1738_v6, %v2126_v28 }
 0x190   : > { %v3778_v18 = vpop.permute.xlu2 %2153 }
 0x191   : > { %v2149_v54 = vpop.permute.xlu1 %2148  ;;  %v2156_v36 = vunpack.i.h.bf16 %v3778_v18  ;;  %v2155_v22 = vunpack.i.l.bf16 %v3778_v18 }
 0x192   : > { %v2129_v35 = vpop.permute.xlu0 %2128  ;;  %v2151_v8 = vunpack.i.h.bf16 %v2149_v54  ;;  %v2150_v43 = vunpack.i.l.bf16 %v2149_v54 }
 0x193   : > { %v2131_v38 = vunpack.i.h.bf16 %v2129_v35  ;;  %v2130_v20 = vunpack.i.l.bf16 %v2129_v35  ;;  %v1704_v18 = vsel %vm1702_vm6, %v1698_v12, %v2155_v22 }
 0x195   : > { %v1718_v26 = vsel %vm1714_vm9, %v1712_v21, %v2130_v20  ;;  %v1754_v27 = vsel %vm1714_vm9, %v1749_v51, %v2131_v38  ;;  %v1742_v38 = vsel %vm1702_vm6, %v1737_v58, %v2156_v36 }
 0x196   : > { %v1724_v40 = vsel %vm1720_vm8, %v1718_v26, %v2150_v43  ;;  %v1759_v46 = vsel %vm1720_vm8, %v1754_v27, %v2151_v8 }
 0x197   : > { %1791 = vmatpush.msra.mxu0 %v1724_v40  ;;  %1811 = vmatpush.msra.mxu1 %v1759_v46 }
 0x198   : > { %v2169_v59 = vpop.permute.xlu2 %2168 }
 0x199   : > { %v3786_v7 = vpop.permute.xlu1 %2163  ;;  %v2171_v13 = vunpack.i.h.bf16 %v2169_v59  ;;  %v2170_v45 = vunpack.i.l.bf16 %v2169_v59  ;;  %v2136_v59 = vunpack.i.h.bf16 %v3756_v16 }
 0x19a   : > { %v2144_v29 = vpop.permute.xlu0 %2143  ;;  %v2166_v42 = vunpack.i.h.bf16 %v3786_v7  ;;  %v2165_v32 = vunpack.i.l.bf16 %v3786_v7 }
 0x19b   : > { %v2146_v30 = vunpack.i.h.bf16 %v2144_v29  ;;  %v2145_v1 = vunpack.i.l.bf16 %v2144_v29  ;;  %v1710_v51 = vsel %vm1708_vm7, %v1704_v18, %v2170_v45  ;;  %v1747_v26 = vsel %vm1708_vm7, %v1742_v38, %v2171_v13 }
 0x19c   : > { %v1731_v5 = vsel %vm1690_vm4, %v3727_v34, %v2136_v59  ;;  %v1697_v2 = vsel %vm1696_vm5, %v3691_v60, %v2165_v32 }
 0x19d   : > { %v1711_v15 = vsel %vm1708_vm7, %v1705_v53, %v2145_v1  ;;  %v1748_v50 = vsel %vm1708_vm7, %v1743_v55, %v2146_v30  ;;  %v1736_v14 = vsel %vm1696_vm5, %v1731_v5, %v2166_v42 }
 0x1a0   : > { %v2184_v56 = vpop.permute.xlu2 %2183 }
 0x1a1   : > { %v3794_v41 = vpop.permute.xlu1 %2178  ;;  %v2186_v62 = vunpack.i.h.bf16 %v2184_v56  ;;  %v2185_v44 = vunpack.i.l.bf16 %v2184_v56 }
 0x1a2   : > { %v2159_v24 = vpop.permute.xlu0 %2158  ;;  %v2181_v47 = vunpack.i.h.bf16 %v3794_v41  ;;  %v2180_v0 = vunpack.i.l.bf16 %v3794_v41 }
 0x1a3   : > { %v2161_v48 = vunpack.i.h.bf16 %v2159_v24  ;;  %v2160_v25 = vunpack.i.l.bf16 %v2159_v24  ;;  %v1716_v27 = vsel %vm1714_vm9, %v1710_v51, %v2185_v44  ;;  %v1752_v40 = vsel %vm1714_vm9, %v1747_v26, %v2186_v62 }
 0x1a4   : > { %v1703_v24 = vsel %vm1702_vm6, %v1697_v2, %v2180_v0  ;;  %v1741_v52 = vsel %vm1702_vm6, %v1736_v14, %v2181_v47 }
 0x1a5   : > { %v1717_v20 = vsel %vm1714_vm9, %v1711_v15, %v2160_v25  ;;  %v1753_v8 = vsel %vm1714_vm9, %v1748_v50, %v2161_v48 }
 0x1a8   : > { %v2199_v16 = vpop.permute.xlu2 %2198 }
 0x1a9   : > { %v2194_v33 = vpop.permute.xlu1 %2193  ;;  %v2201_v41 = vunpack.i.h.bf16 %v2199_v16  ;;  %v2200_v17 = vunpack.i.l.bf16 %v2199_v16 }
 0x1aa   : > { %v2174_v54 = vpop.permute.xlu0 %2173  ;;  %v2196_v10 = vunpack.i.h.bf16 %v2194_v33  ;;  %v2195_v23 = vunpack.i.l.bf16 %v2194_v33 }
 0x1ab   : > { %v2176_v57 = vunpack.i.h.bf16 %v2174_v54  ;;  %v2175_v35 = vunpack.i.l.bf16 %v2174_v54 }
 0x1ac   : > { %v1722_v46 = vsel %vm1720_vm8, %v1716_v27, %v2195_v23  ;;  %v1757_v29 = vsel %vm1720_vm8, %v1752_v40, %v2196_v10 }
 0x1ad   : > { %v1723_v43 = vsel %vm1720_vm8, %v1717_v20, %v2175_v35  ;;  %v1758_v21 = vsel %vm1720_vm8, %v1753_v8, %v2176_v57 }
 0x1ae   : > { %1792 = vmatpush.msra.mxu0 %v1723_v43  ;;  %1812 = vmatpush.msra.mxu1 %v1758_v21 }
 0x1b0   : > { %1793 = vmatpush.msra.mxu0 %v1722_v46  ;;  %1813 = vmatpush.msra.mxu1 %v1757_v29 }
 0x1b2   : > { %v2189_v31 = vpop.permute.xlu0 %2188 }
 0x1b3   : > { %v2191_v11 = vunpack.i.h.bf16 %v2189_v31  ;;  %v2190_v4 = vunpack.i.l.bf16 %v2189_v31 }
 0x1b5   : > { %v1709_v7 = vsel %vm1708_vm7, %v1703_v24, %v2190_v4  ;;  %v1746_v3 = vsel %vm1708_vm7, %v1741_v52, %v2191_v11 }
 0x1b6   : > { %v1715_v60 = vsel %vm1714_vm9, %v1709_v7, %v2200_v17  ;;  %v1751_v49 = vsel %vm1714_vm9, %v1746_v3, %v2201_v41 }
 0x1ba   : > { %v2204_v63 = vpop.permute.xlu0 %2203 }
 0x1bb   : > { %v2206_v34 = vunpack.i.h.bf16 %v2204_v63  ;;  %v2205_v37 = vunpack.i.l.bf16 %v2204_v63 }
 0x1bd   : > { %v1721_v9 = vsel %vm1720_vm8, %v1715_v60, %v2205_v37  ;;  %v1756_v19 = vsel %vm1720_vm8, %v1751_v49, %v2206_v34 }
 0x1be   : > { %1794 = vmatpush.msra.mxu0 %v1721_v9  ;;  %1814 = vmatpush.msra.mxu1 %v1756_v19 }
 0x1bf   : > { %1906 = vmatmul.msk.f32.vlgmr.msra.gmra.mxu0 %vm1768_vm11, %v1761_v39  ;;  %1908 = vmatmul.msk.f32.vlgmr.msra.gmra.mxu1 %vm1768_vm11, %v1761_v39 }
 0x1f1   : > { %v1766_v6 = vpop.permute.xlu1 %1765 }
 0x23c   : > { %v1796_v30 = vpop.f32.mrf.mxu0  ;;  %v1816_v1 = vpop.f32.mrf.mxu1 }
 0x23d   : > { %v1797_v28 = vadd.f32 %v1796_v30, %v1766_v6  ;;  %v1817_v61 = vadd.f32 %v1816_v1, %v1766_v6 }
 0x23f   : > { %v1819_v12 = vmax.f32 %v1797_v28, 0.0  ;;  %v1820_v58 = vmax.f32 %v1817_v61, 0.0 }
 0x241   : > { %1821 = vst [vmem:[%s163_s30] sm:$0xff] %v1819_v12 }
 0x242   : > { %1822 = vst [vmem:[%s163_s30 + $0x8] sm:$0xff] %v1820_v58 }
 0x243   : > { %2240 = shalt.err (!%p2237_p3)
}
 0x244   : > { %1916 = dma.vmem_to_hbm [thread:$0]  (%p2347_p5), %s1838_s4, 256, %s1840_s5, %s1824_s16  }
 0x245 PF: > { %p1922_p4 = scmp.ge.s32.totalorder %s2275_s15, 2  ;;  %s1851_s19 = sand.u32 1, %s2263_s12  }
 0x246   : > { %s1852_s20 = scalar_lea.sflag [#allocation3], %s1851_s19 }
 0x247   : > { %p1919_p7 = pnand %p1922_p4, %p2351_p6 }
 0x249   : > { %p1920_p8 = pneg %p1919_p7 }
 0x24b   : > { %2258 = dma.done.wait (%p1920_p8), %s1852_s20, 256  }
 0x24c   : > { %2260 = vsyncadd (%p1920_p8), %s1852_s20, 4294967040  ;;  %p13_p9 = scmp.ge.s32.totalorder %s2334_s18, 4   ;;  %s4109_s12 = smov %s2267_s13 }
 0x24d   : > { %s4110_s13 = smov %s2271_s14  ;;  %s4111_s14 = smov %s2345_s21 }
 0x24e   : > { %s4112_s15 = smov %s2334_s18  ;;  %15 = sbr.rel (!%p13_p9) target bundleno = 3 (0x3), region = 67 }
 0x253   :  { %1858 = vsyncpa [#allocation3], 1 }
 0x254   :  { %1860 = vsyncpa [#allocation3 + $0x1], 1 }

</bundles_post_ra>
